<compile_context>
chip_gen: v7x
topology: tpu7x:2x2x1
jax: 0.10.0
libtpu: 0.0.40
codegen_flags: <defaults>
</compile_context>

<pallas_src>
import jax
import jax.numpy as jnp
from jax.experimental import pallas as pl
from jax.experimental.pallas import tpu as pltpu

# ---------------- model hyperparameters (small, deterministic) ----------------
ANGLE_FEAT_SIZE = 4
EMBEDDING_SIZE = 16
HIDDEN_SIZE = 32
IMG_FEAT = 64                              # stands in for 2048 in the real model
FEATURE_SIZE = IMG_FEAT + ANGLE_FEAT_SIZE  # 68
NUM_VIEWS = 36
SEQ_LEN = 8
NUM_CAND = 6
BATCH = 2

# padded sizes
LANE = 128
EP = 128   # padded embedding size (lane block)
HP = 128   # padded hidden size (lane block)
FP = 128   # padded feature size (lane block)
CP = 8     # padded candidate count (sublane multiple of NUM_CAND; NOT 128 — avoids 16x dead DMA)
NUM_OUT_BLOCKS = 6   # h1, c1, h_tilde, u_tilde, attn_feat, logit

_NEG_BIG = -1e30  # stands in for -inf in masked_fill_ (avoids inf-inf NaN paths)


# ------------------------------- kernel helpers -------------------------------
def _softmax_last(x):
    m = jnp.max(x, axis=-1, keepdims=True)
    e = jnp.exp(x - m)
    denom = jnp.sum(e, axis=-1, keepdims=True)
    return e * pl.reciprocal(denom, approx=True)   # approx rcp only in softmax denom


def _sigmoid_exact(x):
    # exact sigmoid via tanh identity: one EUP push, no approx error in recurrent state
    return 0.5 * (jnp.tanh(0.5 * x) + 1.0)


# ----------------------------------- kernel -----------------------------------
def decoder_kernel(
    # data
    action_ref, feature_ref, cand_ref, prev_h1_ref, c0_ref, ctx_ref, mask_ref,
    # params (pre-transposed / pre-split / pre-padded ONCE in prepare_decoder_weights)
    w_emb_ref, b_emb_ref,                  # embedding Linear + Tanh
    w_in_feat_ref,                         # feat_att_layer.linear_in           (bf16)
    w_ih_ah_ref,                           # stacked [w_ih(action); w_hh] gates (f32, K=256)
    w_ih_f_ref,                            # feature rows of w_ih               (bf16)
    b_gates_ref,                           # b_ih + b_hh, gate-block scattered
    w_in_ctx_ref, w_out_u_ref, w_out_h_ref,  # attention_layer linear_in / linear_out (split)
    w_in_cand_ref,                         # candidate_att_layer.linear_in      (bf16)
    # output: lane-dense slab [B, 6*128]
    out_ref,
    # scratch: [B, 256] staging for the merged gate matmul LHS
    ah_scratch,
):
    f32, bf16 = jnp.float32, jnp.bfloat16

    # bf16 tensors go straight to the MXU (f32 accumulation); no VMEM-resident f32 copies.
    feature = feature_ref[...]            # [B, V, FP]  bf16
    cand = cand_ref[...]                  # [B, CP, FP] bf16
    ctx = ctx_ref[...]                    # [B, S, HP]  bf16

    prev_h1 = prev_h1_ref[...]            # [B, HP] f32
    c0 = c0_ref[...]                      # [B, HP] f32
    mask = mask_ref[...]                  # [B, S]  f32 (1.0 == masked)

    # --- action embedding: Tanh(Linear(action)); dropout = identity (eval) ---
    action_emb = jnp.tanh(
        jnp.dot(action_ref[...], w_emb_ref[...], preferred_element_type=f32)
        + b_emb_ref[...])                                                       # [B, EP]

    # --- feat_att_layer(prev_h1, feature, output_tilde=False): bf16 MXU matmuls ---
    tgt_f = jnp.dot(prev_h1.astype(bf16), w_in_feat_ref[...],
                    preferred_element_type=f32)                                 # [B, FP]
    s_f = jnp.einsum("bqf,bvf->bqv", tgt_f.astype(bf16)[:, None, :], feature,
                     preferred_element_type=f32)                                # [B, 1, V]
    a_f = _softmax_last(s_f)
    attn_feat = jnp.einsum("bqv,bvf->bqf", a_f.astype(bf16), feature,
                           preferred_element_type=f32)[:, 0, :]                 # [B, FP] f32

    # --- LSTMCell(cat(action_emb, attn_feat), (prev_h1, c_0)) ---
    # merged K=256 gate matmul: action_emb | prev_h1 in adjacent 128-lane blocks
    ah_scratch[:, 0 * LANE:1 * LANE] = action_emb
    ah_scratch[:, 1 * LANE:2 * LANE] = prev_h1
    gates = (jnp.dot(ah_scratch[...], w_ih_ah_ref[...], preferred_element_type=f32)
             + jnp.dot(attn_feat.astype(bf16), w_ih_f_ref[...], preferred_element_type=f32)
             + b_gates_ref[...])                                                # [B, 4*HP]
    i_g = _sigmoid_exact(gates[:, 0 * HP:1 * HP])
    f_g = _sigmoid_exact(gates[:, 1 * HP:2 * HP])
    g_g = jnp.tanh(gates[:, 2 * HP:3 * HP])
    o_g = _sigmoid_exact(gates[:, 3 * HP:4 * HP])
    c1 = f_g * c0 + i_g * g_g                                                   # [B, HP]
    h1 = o_g * jnp.tanh(c1)                                                     # [B, HP]

    # --- attention_layer(h_1, ctx, ctx_mask) -> h_tilde, u_tilde ---
    tgt_c = jnp.dot(h1, w_in_ctx_ref[...], preferred_element_type=f32)          # [B, HP]
    s_c = jnp.einsum("bqh,bsh->bqs", tgt_c.astype(bf16)[:, None, :], ctx,
                     preferred_element_type=f32)                                # [B, 1, S]
    s_c = jnp.where(mask[:, None, :] > 0.5, jnp.float32(_NEG_BIG), s_c)
    a_c = _softmax_last(s_c)
    u_tilde = jnp.einsum("bqs,bsh->bqh", a_c.astype(bf16), ctx,
                         preferred_element_type=f32)[:, 0, :]                   # [B, HP]
    h_tilde = jnp.tanh(
        jnp.dot(u_tilde, w_out_u_ref[...], preferred_element_type=f32)
        + jnp.dot(h1, w_out_h_ref[...], preferred_element_type=f32))            # [B, HP]

    # --- candidate_att_layer(h_tilde, cand_feat, output_prob=False) -> raw logit ---
    tgt_cand = jnp.dot(h_tilde.astype(bf16), w_in_cand_ref[...],
                       preferred_element_type=f32)                              # [B, FP]
    logit = jnp.einsum("bqf,bcf->bqc", tgt_cand.astype(bf16)[:, None, :], cand,
                       preferred_element_type=f32)[:, 0, :]                     # [B, CP]

    # --- lane-dense output slab: five unmasked 128-lane stores + one 8-lane masked store ---
    out_ref[:, 0 * LANE:1 * LANE] = h1
    out_ref[:, 1 * LANE:2 * LANE] = c1
    out_ref[:, 2 * LANE:3 * LANE] = h_tilde
    out_ref[:, 3 * LANE:4 * LANE] = u_tilde
    out_ref[:, 4 * LANE:5 * LANE] = attn_feat
    out_ref[:, 5 * LANE:5 * LANE + CP] = logit


# ------------------------------ wrapper utilities ------------------------------
def _pad_axis(x, target, axis):
    pad = target - x.shape[axis]
    if pad <= 0:
        return x
    widths = [(0, 0)] * x.ndim
    widths[axis] = (0, pad)
    return jnp.pad(x, widths)


def _pad_gate_cols(w):
    """(rows, 4*H) -> (rows, 4*HP) with gate k (PyTorch i,f,g,o order) at lanes [k*HP, k*HP+H)."""
    H = HIDDEN_SIZE
    out = jnp.zeros((w.shape[0], 4 * HP), w.dtype)
    for k in range(4):
        out = out.at[:, k * HP:k * HP + H].set(w[:, k * H:(k + 1) * H])
    return out


def prepare_decoder_weights(params):
    """One-time weight re-layout (pad / split / gate-scatter / bf16 cast). Reuse every step."""
    E, H = EMBEDDING_SIZE, HIDDEN_SIZE
    bf16 = jnp.bfloat16
    w_emb = _pad_axis(params["w_emb_t"], EP, 1)                                # (A, EP)
    b_emb = _pad_axis(params["b_emb"], EP, 1)                                  # (1, EP)
    w_in_feat = _pad_axis(_pad_axis(params["w_in_feat_t"], FP, 1), HP, 0).astype(bf16)
    w_in_cand = _pad_axis(_pad_axis(params["w_in_cand_t"], FP, 1), HP, 0).astype(bf16)
    w_in_ctx = _pad_axis(_pad_axis(params["w_in_ctx_t"], HP, 1), HP, 0)        # (HP, HP)

    w_out = params["w_out_ctx_t"]                                              # (2H, H)
    w_out_u = _pad_axis(_pad_axis(w_out[:H], HP, 1), HP, 0)                    # (HP, HP)
    w_out_h = _pad_axis(_pad_axis(w_out[H:], HP, 1), HP, 0)                    # (HP, HP)

    w_ih = params["w_ih_t"]                                                    # (E+F, 4H)
    w_ih_a = _pad_axis(_pad_gate_cols(w_ih[:E]), EP, 0)                        # (EP, 4*HP)
    w_hh = _pad_axis(_pad_gate_cols(params["w_hh_t"]), HP, 0)                  # (HP, 4*HP)
    w_ih_ah = jnp.concatenate([w_ih_a, w_hh], axis=0)                          # (EP+HP, 4*HP) f32
    w_ih_f = _pad_axis(_pad_gate_cols(w_ih[E:]), FP, 0).astype(bf16)           # (FP, 4*HP)
    b_gates = _pad_gate_cols(params["b_ih"] + params["b_hh"])                  # (1, 4*HP)

    return dict(w_emb=w_emb, b_emb=b_emb, w_in_feat=w_in_feat, w_ih_ah=w_ih_ah,
                w_ih_f=w_ih_f, b_gates=b_gates, w_in_ctx=w_in_ctx,
                w_out_u=w_out_u, w_out_h=w_out_h, w_in_cand=w_in_cand)


def prepare_ctx(ctx):
    """One-time per episode: ctx (encoder output) is step-invariant -> pad + bf16 cast once."""
    return _pad_axis(ctx, HP, 2).astype(jnp.bfloat16)


@jax.jit
def attn_decoder_lstm_step(action, feature, cand_feat, h_0, prev_h1, c_0, ctx_p, ctx_mask, w):
    """One decoder step. h_0 kept for signature parity with the PyTorch forward (unused there too)."""
    del h_0
    B = action.shape[0]
    H, F, C = HIDDEN_SIZE, FEATURE_SIZE, cand_feat.shape[1]
    f32, bf16 = jnp.float32, jnp.bfloat16

    # per-step activations: lane-pad and store big tensors in bf16 (MXU-native)
    feature_p = _pad_axis(feature, FP, 2).astype(bf16)                         # [B, V, FP]
    cand_p = _pad_axis(_pad_axis(cand_feat, FP, 2), CP, 1).astype(bf16)        # [B, CP, FP]
    prev_h1_p = _pad_axis(prev_h1, HP, 1).astype(f32)                          # [B, HP]
    c0_p = _pad_axis(c_0, HP, 1).astype(f32)                                   # [B, HP]

    inputs = (
        action, feature_p, cand_p, prev_h1_p, c0_p, ctx_p, ctx_mask,
        w["w_emb"], w["b_emb"],
        w["w_in_feat"],
        w["w_ih_ah"], w["w_ih_f"], w["b_gates"],
        w["w_in_ctx"], w["w_out_u"], w["w_out_h"],
        w["w_in_cand"],
    )

    vmem = pl.BlockSpec(memory_space=pltpu.MemorySpace.VMEM)
    slab = pl.pallas_call(
        decoder_kernel,
        out_shape=jax.ShapeDtypeStruct((B, NUM_OUT_BLOCKS * LANE), f32),
        in_specs=[vmem] * len(inputs),
        out_specs=vmem,
        scratch_shapes=[pltpu.VMEM((B, 2 * LANE), f32)],
        compiler_params=pltpu.CompilerParams(vmem_limit_bytes=32 * 1024 * 1024),
    )(*inputs)

    # unpack the lane-dense output slab back to logical shapes
    h1 = slab[:, 0 * LANE:0 * LANE + H]
    c1 = slab[:, 1 * LANE:1 * LANE + H]
    h_tilde = slab[:, 2 * LANE:2 * LANE + H]
    u_tilde = slab[:, 3 * LANE:3 * LANE + H]
    attn_feat = slab[:, 4 * LANE:4 * LANE + F]
    logit = slab[:, 5 * LANE:5 * LANE + C]
    return h1, c1, logit, h_tilde, attn_feat, u_tilde


# ---------------------------- pure-JAX reference ----------------------------
def _q(x):
    """bf16 round-trip (mirrors the kernel's bf16 matmul operands)."""
    return x.astype(jnp.bfloat16).astype(jnp.float32)


def reference_forward(action, feature, cand_feat, prev_h1, c_0, ctx, ctx_mask, params):
    H, E = HIDDEN_SIZE, EMBEDDING_SIZE
    feature = _q(feature)
    cand_feat = _q(cand_feat)
    ctx = _q(ctx)

    action_emb = jnp.tanh(action @ params["w_emb_t"] + params["b_emb"])
    tgt_f = _q(_q(prev_h1) @ _q(params["w_in_feat_t"]))
    attn_w = jax.nn.softmax(jnp.einsum("bf,bvf->bv", tgt_f, feature), axis=-1)
    attn_feat = jnp.einsum("bv,bvf->bf", _q(attn_w), feature)

    gates = (action_emb @ params["w_ih_t"][:E]
             + prev_h1 @ params["w_hh_t"]
             + _q(attn_feat) @ _q(params["w_ih_t"][E:])
             + params["b_ih"] + params["b_hh"])
    i_g, f_g, g_g, o_g = (jax.nn.sigmoid(gates[:, :H]), jax.nn.sigmoid(gates[:, H:2 * H]),
                          jnp.tanh(gates[:, 2 * H:3 * H]), jax.nn.sigmoid(gates[:, 3 * H:]))
    c1 = f_g * c_0 + i_g * g_g
    h1 = o_g * jnp.tanh(c1)

    tgt_c = _q(h1 @ params["w_in_ctx_t"])
    s_c = jnp.einsum("bh,bsh->bs", tgt_c, ctx)
    s_c = jnp.where(ctx_mask > 0.5, _NEG_BIG, s_c)
    a_c = jax.nn.softmax(s_c, axis=-1)
    u_tilde = jnp.einsum("bs,bsh->bh", _q(a_c), ctx)
    h_tilde = jnp.tanh(u_tilde @ params["w_out_ctx_t"][:H] + h1 @ params["w_out_ctx_t"][H:])

    tgt_cand = _q(_q(h_tilde) @ _q(params["w_in_cand_t"]))
    logit = jnp.einsum("bf,bcf->bc", tgt_cand, cand_feat)
    return h1, c1, logit, h_tilde, attn_feat, u_tilde


def init_params(key):
    ks = jax.random.split(key, 8)
    E, H, F, A = EMBEDDING_SIZE, HIDDEN_SIZE, FEATURE_SIZE, ANGLE_FEAT_SIZE
    s = 0.1
    return {
        # already transposed to (in_dim, out_dim); PyTorch LSTMCell (i,f,g,o) column order
        "w_emb_t": jax.random.normal(ks[0], (A, E), jnp.float32) * s,
        "b_emb": jax.random.normal(ks[1], (1, E), jnp.float32) * s,
        "w_in_feat_t": jax.random.normal(ks[2], (H, F), jnp.float32) * s,
        "w_ih_t": jax.random.normal(ks[3], (E + F, 4 * H), jnp.float32) * s,
        "b_ih": jax.random.normal(ks[4], (1, 4 * H), jnp.float32) * s,
        "w_hh_t": jax.random.normal(ks[5], (H, 4 * H), jnp.float32) * s,
        "b_hh": jax.random.normal(ks[6], (1, 4 * H), jnp.float32) * s,
        "w_in_ctx_t": jax.random.normal(ks[7], (H, H), jnp.float32) * s,
        "w_out_ctx_t": jax.random.normal(jax.random.fold_in(key, 100), (2 * H, H), jnp.float32) * s,
        "w_in_cand_t": jax.random.normal(jax.random.fold_in(key, 101), (H, F), jnp.float32) * s,
    }


if __name__ == "__main__":
    key = jax.random.PRNGKey(0)
    kd = jax.random.split(key, 8)

    action = jax.random.normal(kd[0], (BATCH, ANGLE_FEAT_SIZE), jnp.float32)
    feature = jax.random.normal(kd[1], (BATCH, NUM_VIEWS, FEATURE_SIZE), jnp.float32)
    cand_feat = jax.random.normal(kd[2], (BATCH, NUM_CAND, FEATURE_SIZE), jnp.float32)
    h_0 = jax.random.normal(kd[3], (BATCH, HIDDEN_SIZE), jnp.float32)
    prev_h1 = jax.random.normal(kd[4], (BATCH, HIDDEN_SIZE), jnp.float32)
    c_0 = jax.random.normal(kd[5], (BATCH, HIDDEN_SIZE), jnp.float32)
    ctx = jax.random.normal(kd[6], (BATCH, SEQ_LEN, HIDDEN_SIZE), jnp.float32)
    # 1.0 = masked (same semantics as torch masked_fill_ with a bool mask)
    ctx_mask = jnp.zeros((BATCH, SEQ_LEN), jnp.float32).at[0, 6:].set(1.0).at[1, 5:].set(1.0)

    params = init_params(jax.random.fold_in(key, 7))

    # one-time preparation (hoisted out of the per-step path)
    prepped_weights = prepare_decoder_weights(params)
    ctx_p = prepare_ctx(ctx)

    outs = attn_decoder_lstm_step(action, feature, cand_feat, h_0, prev_h1, c_0,
                                  ctx_p, ctx_mask, prepped_weights)
    outs = jax.block_until_ready(outs)

    refs = reference_forward(action, feature, cand_feat, prev_h1, c_0, ctx, ctx_mask, params)
    names = ("h_1", "c_1", "logit", "h_tilde", "attn_feat", "u_tilde")
    for name, o, r in zip(names, outs, refs):
        assert o.shape == r.shape, (name, o.shape, r.shape)
        err = float(jnp.max(jnp.abs(o - r)))
        assert jnp.allclose(o, r, atol=2e-2, rtol=2e-2), (name, err)

    print("KERNEL_OK")
</pallas_src>

<mosaic_0001>
module attributes {stable_mosaic.version = 11 : i64} {
  func.func @decoder_kernel(%arg0: memref<2x4xf32, #tpu.memory_space<vmem>>, %arg1: memref<2x36x128xbf16, #tpu.memory_space<vmem>>, %arg2: memref<2x8x128xbf16, #tpu.memory_space<vmem>>, %arg3: memref<2x128xf32, #tpu.memory_space<vmem>>, %arg4: memref<2x128xf32, #tpu.memory_space<vmem>>, %arg5: memref<2x8x128xbf16, #tpu.memory_space<vmem>>, %arg6: memref<2x8xf32, #tpu.memory_space<vmem>>, %arg7: memref<4x128xf32, #tpu.memory_space<vmem>>, %arg8: memref<1x128xf32, #tpu.memory_space<vmem>>, %arg9: memref<128x128xbf16, #tpu.memory_space<vmem>>, %arg10: memref<256x512xf32, #tpu.memory_space<vmem>>, %arg11: memref<128x512xbf16, #tpu.memory_space<vmem>>, %arg12: memref<1x512xf32, #tpu.memory_space<vmem>>, %arg13: memref<128x128xf32, #tpu.memory_space<vmem>>, %arg14: memref<128x128xf32, #tpu.memory_space<vmem>>, %arg15: memref<128x128xf32, #tpu.memory_space<vmem>>, %arg16: memref<128x128xbf16, #tpu.memory_space<vmem>>, %arg17: memref<2x768xf32, #tpu.memory_space<vmem>>, %arg18: memref<2x256xf32, #tpu.memory_space<vmem>>) attributes {dimension_semantics = [], scalar_prefetch = 0 : i64, scratch_operands = 1 : i64, tpu.core_type = #tpu.core_type<tc>} {
    %c0 = arith.constant 0 : index
    %c0_0 = arith.constant 0 : index
    %c0_1 = arith.constant 0 : index
    %0 = vector.load %arg1[%c0, %c0_0, %c0_1] : memref<2x36x128xbf16, #tpu.memory_space<vmem>>, vector<2x36x128xbf16>
    %c0_2 = arith.constant 0 : index
    %c0_3 = arith.constant 0 : index
    %c0_4 = arith.constant 0 : index
    %1 = vector.load %arg2[%c0_2, %c0_3, %c0_4] : memref<2x8x128xbf16, #tpu.memory_space<vmem>>, vector<2x8x128xbf16>
    %c0_5 = arith.constant 0 : index
    %c0_6 = arith.constant 0 : index
    %c0_7 = arith.constant 0 : index
    %2 = vector.load %arg5[%c0_5, %c0_6, %c0_7] : memref<2x8x128xbf16, #tpu.memory_space<vmem>>, vector<2x8x128xbf16>
    %c0_8 = arith.constant 0 : index
    %c0_9 = arith.constant 0 : index
    %3 = vector.load %arg3[%c0_8, %c0_9] : memref<2x128xf32, #tpu.memory_space<vmem>>, vector<2x128xf32>
    %c0_10 = arith.constant 0 : index
    %c0_11 = arith.constant 0 : index
    %4 = vector.load %arg4[%c0_10, %c0_11] : memref<2x128xf32, #tpu.memory_space<vmem>>, vector<2x128xf32>
    %c0_12 = arith.constant 0 : index
    %c0_13 = arith.constant 0 : index
    %5 = vector.load %arg6[%c0_12, %c0_13] : memref<2x8xf32, #tpu.memory_space<vmem>>, vector<2x8xf32>
    %c0_14 = arith.constant 0 : index
    %c0_15 = arith.constant 0 : index
    %6 = vector.load %arg0[%c0_14, %c0_15] : memref<2x4xf32, #tpu.memory_space<vmem>>, vector<2x4xf32>
    %c0_16 = arith.constant 0 : index
    %c0_17 = arith.constant 0 : index
    %7 = vector.load %arg7[%c0_16, %c0_17] : memref<4x128xf32, #tpu.memory_space<vmem>>, vector<4x128xf32>
    %cst = arith.constant dense<0.000000e+00> : vector<2x128xf32>
    %8 = tpu.matmul %6, %7, %cst {dimension_numbers = #tpu.dot_dimension_numbers<[1], [0], [0], [1], [0, 0, 1, 1], [], []>} : vector<2x4xf32>, vector<4x128xf32>, vector<2x128xf32> -> vector<2x128xf32>
    %c0_18 = arith.constant 0 : index
    %c0_19 = arith.constant 0 : index
    %9 = vector.load %arg8[%c0_18, %c0_19] : memref<1x128xf32, #tpu.memory_space<vmem>>, vector<1x128xf32>
    %10 = vector.broadcast %9 : vector<1x128xf32> to vector<2x128xf32>
    %11 = arith.addf %8, %10 : vector<2x128xf32>
    %12 = math.tanh %11 : vector<2x128xf32>
    %13 = arith.truncf %3 : vector<2x128xf32> to vector<2x128xbf16>
    %c0_20 = arith.constant 0 : index
    %c0_21 = arith.constant 0 : index
    %14 = vector.load %arg9[%c0_20, %c0_21] : memref<128x128xbf16, #tpu.memory_space<vmem>>, vector<128x128xbf16>
    %cst_22 = arith.constant dense<0.000000e+00> : vector<2x128xf32>
    %15 = tpu.matmul %13, %14, %cst_22 {dimension_numbers = #tpu.dot_dimension_numbers<[1], [0], [0], [1], [0, 0, 1, 1], [], []>} : vector<2x128xbf16>, vector<128x128xbf16>, vector<2x128xf32> -> vector<2x128xf32>
    %16 = arith.truncf %15 : vector<2x128xf32> to vector<2x128xbf16>
    %17 = vector.shape_cast %16 : vector<2x128xbf16> to vector<2x1x128xbf16>
    "tpu.trace_start"() <{level = 10 : i32, message = "bqf,bvf->bqv"}> : () -> ()
    %cst_23 = arith.constant dense<0.000000e+00> : vector<2x1x36xf32>
    %18 = tpu.matmul %17, %0, %cst_23 {dimension_numbers = #tpu.dot_dimension_numbers<[2], [2], [1], [1], [0, 0, 0, 1, 1, 1], [0], [0]>} : vector<2x1x128xbf16>, vector<2x36x128xbf16>, vector<2x1x36xf32> -> vector<2x1x36xf32>
    "tpu.trace_stop"() : () -> ()
    %cst_24 = arith.constant dense<0xFF800000> : vector<2x1xf32>
    %19 = vector.multi_reduction <maximumf>, %18, %cst_24 [2] : vector<2x1x36xf32> to vector<2x1xf32>
    %20 = vector.shape_cast %19 : vector<2x1xf32> to vector<2x1x1xf32>
    %21 = vector.broadcast %20 : vector<2x1x1xf32> to vector<2x1x36xf32>
    %22 = arith.subf %18, %21 : vector<2x1x36xf32>
    %23 = math.exp %22 : vector<2x1x36xf32>
    %cst_25 = arith.constant dense<0.000000e+00> : vector<2x1xf32>
    %24 = vector.multi_reduction <add>, %23, %cst_25 [2] : vector<2x1x36xf32> to vector<2x1xf32>
    %25 = vector.shape_cast %24 : vector<2x1xf32> to vector<2x1x1xf32>
    %26 = tpu.reciprocal %25 {approx = true} : vector<2x1x1xf32> -> vector<2x1x1xf32>
    %27 = vector.broadcast %26 : vector<2x1x1xf32> to vector<2x1x36xf32>
    %28 = arith.mulf %23, %27 : vector<2x1x36xf32>
    %29 = arith.truncf %28 : vector<2x1x36xf32> to vector<2x1x36xbf16>
    "tpu.trace_start"() <{level = 10 : i32, message = "bqv,bvf->bqf"}> : () -> ()
    %cst_26 = arith.constant dense<0.000000e+00> : vector<2x1x128xf32>
    %30 = tpu.matmul %29, %0, %cst_26 {dimension_numbers = #tpu.dot_dimension_numbers<[2], [1], [1], [2], [0, 0, 0, 1, 1, 2], [0], [0]>} : vector<2x1x36xbf16>, vector<2x36x128xbf16>, vector<2x1x128xf32> -> vector<2x1x128xf32>
    "tpu.trace_stop"() : () -> ()
    %31 = vector.shape_cast %30 : vector<2x1x128xf32> to vector<2x128xf32>
    %c0_27 = arith.constant 0 : index
    %c0_28 = arith.constant 0 : index
    %32 = vector.load %arg18[%c0_27, %c0_28] : memref<2x256xf32, #tpu.memory_space<vmem>>, vector<2x128xf32>
    tpu.vector_store %arg18[%c0_27, %c0_28], %12 {strides = array<i32>} : memref<2x256xf32, #tpu.memory_space<vmem>>, vector<2x128xf32>,
    %c0_29 = arith.constant 0 : index
    %c128 = arith.constant 128 : index
    %33 = vector.load %arg18[%c0_29, %c128] : memref<2x256xf32, #tpu.memory_space<vmem>>, vector<2x128xf32>
    tpu.vector_store %arg18[%c0_29, %c128], %3 {strides = array<i32>} : memref<2x256xf32, #tpu.memory_space<vmem>>, vector<2x128xf32>,
    %c0_30 = arith.constant 0 : index
    %c0_31 = arith.constant 0 : index
    %34 = vector.load %arg18[%c0_30, %c0_31] : memref<2x256xf32, #tpu.memory_space<vmem>>, vector<2x256xf32>
    %c0_32 = arith.constant 0 : index
    %c0_33 = arith.constant 0 : index
    %35 = vector.load %arg10[%c0_32, %c0_33] : memref<256x512xf32, #tpu.memory_space<vmem>>, vector<256x512xf32>
    %cst_34 = arith.constant dense<0.000000e+00> : vector<2x512xf32>
    %36 = tpu.matmul %34, %35, %cst_34 {dimension_numbers = #tpu.dot_dimension_numbers<[1], [0], [0], [1], [0, 0, 1, 1], [], []>} : vector<2x256xf32>, vector<256x512xf32>, vector<2x512xf32> -> vector<2x512xf32>
    %37 = arith.truncf %31 : vector<2x128xf32> to vector<2x128xbf16>
    %c0_35 = arith.constant 0 : index
    %c0_36 = arith.constant 0 : index
    %38 = vector.load %arg11[%c0_35, %c0_36] : memref<128x512xbf16, #tpu.memory_space<vmem>>, vector<128x512xbf16>
    %cst_37 = arith.constant dense<0.000000e+00> : vector<2x512xf32>
    %39 = tpu.matmul %37, %38, %cst_37 {dimension_numbers = #tpu.dot_dimension_numbers<[1], [0], [0], [1], [0, 0, 1, 1], [], []>} : vector<2x128xbf16>, vector<128x512xbf16>, vector<2x512xf32> -> vector<2x512xf32>
    %40 = arith.addf %36, %39 : vector<2x512xf32>
    %c0_38 = arith.constant 0 : index
    %c0_39 = arith.constant 0 : index
    %41 = vector.load %arg12[%c0_38, %c0_39] : memref<1x512xf32, #tpu.memory_space<vmem>>, vector<1x512xf32>
    %42 = vector.broadcast %41 : vector<1x512xf32> to vector<2x512xf32>
    %43 = arith.addf %40, %42 : vector<2x512xf32>
    %44 = vector.extract_strided_slice %43 {offsets = [0, 0], sizes = [2, 128], strides = [1, 1]} : vector<2x512xf32> to vector<2x128xf32>
    %cst_40 = arith.constant 5.000000e-01 : f32
    %45 = vector.broadcast %cst_40 : f32 to vector<2x128xf32>
    %46 = arith.mulf %45, %44 : vector<2x128xf32>
    %47 = math.tanh %46 : vector<2x128xf32>
    %cst_41 = arith.constant 1.000000e+00 : f32
    %48 = vector.broadcast %cst_41 : f32 to vector<2x128xf32>
    %49 = arith.addf %47, %48 : vector<2x128xf32>
    %cst_42 = arith.constant 5.000000e-01 : f32
    %50 = vector.broadcast %cst_42 : f32 to vector<2x128xf32>
    %51 = arith.mulf %50, %49 : vector<2x128xf32>
    %52 = vector.extract_strided_slice %43 {offsets = [0, 128], sizes = [2, 128], strides = [1, 1]} : vector<2x512xf32> to vector<2x128xf32>
    %cst_43 = arith.constant 5.000000e-01 : f32
    %53 = vector.broadcast %cst_43 : f32 to vector<2x128xf32>
    %54 = arith.mulf %53, %52 : vector<2x128xf32>
    %55 = math.tanh %54 : vector<2x128xf32>
    %cst_44 = arith.constant 1.000000e+00 : f32
    %56 = vector.broadcast %cst_44 : f32 to vector<2x128xf32>
    %57 = arith.addf %55, %56 : vector<2x128xf32>
    %cst_45 = arith.constant 5.000000e-01 : f32
    %58 = vector.broadcast %cst_45 : f32 to vector<2x128xf32>
    %59 = arith.mulf %58, %57 : vector<2x128xf32>
    %60 = vector.extract_strided_slice %43 {offsets = [0, 256], sizes = [2, 128], strides = [1, 1]} : vector<2x512xf32> to vector<2x128xf32>
    %61 = math.tanh %60 : vector<2x128xf32>
    %62 = vector.extract_strided_slice %43 {offsets = [0, 384], sizes = [2, 128], strides = [1, 1]} : vector<2x512xf32> to vector<2x128xf32>
    %cst_46 = arith.constant 5.000000e-01 : f32
    %63 = vector.broadcast %cst_46 : f32 to vector<2x128xf32>
    %64 = arith.mulf %63, %62 : vector<2x128xf32>
    %65 = math.tanh %64 : vector<2x128xf32>
    %cst_47 = arith.constant 1.000000e+00 : f32
    %66 = vector.broadcast %cst_47 : f32 to vector<2x128xf32>
    %67 = arith.addf %65, %66 : vector<2x128xf32>
    %cst_48 = arith.constant 5.000000e-01 : f32
    %68 = vector.broadcast %cst_48 : f32 to vector<2x128xf32>
    %69 = arith.mulf %68, %67 : vector<2x128xf32>
    %70 = arith.mulf %59, %4 : vector<2x128xf32>
    %71 = arith.mulf %51, %61 : vector<2x128xf32>
    %72 = arith.addf %70, %71 : vector<2x128xf32>
    %73 = math.tanh %72 : vector<2x128xf32>
    %74 = arith.mulf %69, %73 : vector<2x128xf32>
    %c0_49 = arith.constant 0 : index
    %c0_50 = arith.constant 0 : index
    %75 = vector.load %arg13[%c0_49, %c0_50] : memref<128x128xf32, #tpu.memory_space<vmem>>, vector<128x128xf32>
    %cst_51 = arith.constant dense<0.000000e+00> : vector<2x128xf32>
    %76 = tpu.matmul %74, %75, %cst_51 {dimension_numbers = #tpu.dot_dimension_numbers<[1], [0], [0], [1], [0, 0, 1, 1], [], []>} : vector<2x128xf32>, vector<128x128xf32>, vector<2x128xf32> -> vector<2x128xf32>
    %77 = arith.truncf %76 : vector<2x128xf32> to vector<2x128xbf16>
    %78 = vector.shape_cast %77 : vector<2x128xbf16> to vector<2x1x128xbf16>
    "tpu.trace_start"() <{level = 10 : i32, message = "bqh,bsh->bqs"}> : () -> ()
    %cst_52 = arith.constant dense<0.000000e+00> : vector<2x1x8xf32>
    %79 = tpu.matmul %78, %2, %cst_52 {dimension_numbers = #tpu.dot_dimension_numbers<[2], [2], [1], [1], [0, 0, 0, 1, 1, 1], [0], [0]>} : vector<2x1x128xbf16>, vector<2x8x128xbf16>, vector<2x1x8xf32> -> vector<2x1x8xf32>
    "tpu.trace_stop"() : () -> ()
    %80 = vector.shape_cast %5 : vector<2x8xf32> to vector<2x1x8xf32>
    %cst_53 = arith.constant 5.000000e-01 : f32
    %81 = vector.broadcast %cst_53 : f32 to vector<2x1x8xf32>
    %82 = arith.cmpf ogt, %80, %81 : vector<2x1x8xf32>
    %cst_54 = arith.constant -1.000000e+30 : f32
    %83 = vector.broadcast %cst_54 : f32 to vector<2x1x8xf32>
    %84 = arith.select %82, %83, %79 : vector<2x1x8xi1>, vector<2x1x8xf32>
    %cst_55 = arith.constant dense<0xFF800000> : vector<2x1xf32>
    %85 = vector.multi_reduction <maximumf>, %84, %cst_55 [2] : vector<2x1x8xf32> to vector<2x1xf32>
    %86 = vector.shape_cast %85 : vector<2x1xf32> to vector<2x1x1xf32>
    %87 = vector.broadcast %86 : vector<2x1x1xf32> to vector<2x1x8xf32>
    %88 = arith.subf %84, %87 : vector<2x1x8xf32>
    %89 = math.exp %88 : vector<2x1x8xf32>
    %cst_56 = arith.constant dense<0.000000e+00> : vector<2x1xf32>
    %90 = vector.multi_reduction <add>, %89, %cst_56 [2] : vector<2x1x8xf32> to vector<2x1xf32>
    %91 = vector.shape_cast %90 : vector<2x1xf32> to vector<2x1x1xf32>
    %92 = tpu.reciprocal %91 {approx = true} : vector<2x1x1xf32> -> vector<2x1x1xf32>
    %93 = vector.broadcast %92 : vector<2x1x1xf32> to vector<2x1x8xf32>
    %94 = arith.mulf %89, %93 : vector<2x1x8xf32>
    %95 = arith.truncf %94 : vector<2x1x8xf32> to vector<2x1x8xbf16>
    "tpu.trace_start"() <{level = 10 : i32, message = "bqs,bsh->bqh"}> : () -> ()
    %cst_57 = arith.constant dense<0.000000e+00> : vector<2x1x128xf32>
    %96 = tpu.matmul %95, %2, %cst_57 {dimension_numbers = #tpu.dot_dimension_numbers<[2], [1], [1], [2], [0, 0, 0, 1, 1, 2], [0], [0]>} : vector<2x1x8xbf16>, vector<2x8x128xbf16>, vector<2x1x128xf32> -> vector<2x1x128xf32>
    "tpu.trace_stop"() : () -> ()
    %97 = vector.shape_cast %96 : vector<2x1x128xf32> to vector<2x128xf32>
    %c0_58 = arith.constant 0 : index
    %c0_59 = arith.constant 0 : index
    %98 = vector.load %arg14[%c0_58, %c0_59] : memref<128x128xf32, #tpu.memory_space<vmem>>, vector<128x128xf32>
    %cst_60 = arith.constant dense<0.000000e+00> : vector<2x128xf32>
    %99 = tpu.matmul %97, %98, %cst_60 {dimension_numbers = #tpu.dot_dimension_numbers<[1], [0], [0], [1], [0, 0, 1, 1], [], []>} : vector<2x128xf32>, vector<128x128xf32>, vector<2x128xf32> -> vector<2x128xf32>
    %c0_61 = arith.constant 0 : index
    %c0_62 = arith.constant 0 : index
    %100 = vector.load %arg15[%c0_61, %c0_62] : memref<128x128xf32, #tpu.memory_space<vmem>>, vector<128x128xf32>
    %cst_63 = arith.constant dense<0.000000e+00> : vector<2x128xf32>
    %101 = tpu.matmul %74, %100, %cst_63 {dimension_numbers = #tpu.dot_dimension_numbers<[1], [0], [0], [1], [0, 0, 1, 1], [], []>} : vector<2x128xf32>, vector<128x128xf32>, vector<2x128xf32> -> vector<2x128xf32>
    %102 = arith.addf %99, %101 : vector<2x128xf32>
    %103 = math.tanh %102 : vector<2x128xf32>
    %104 = arith.truncf %103 : vector<2x128xf32> to vector<2x128xbf16>
    %c0_64 = arith.constant 0 : index
    %c0_65 = arith.constant 0 : index
    %105 = vector.load %arg16[%c0_64, %c0_65] : memref<128x128xbf16, #tpu.memory_space<vmem>>, vector<128x128xbf16>
    %cst_66 = arith.constant dense<0.000000e+00> : vector<2x128xf32>
    %106 = tpu.matmul %104, %105, %cst_66 {dimension_numbers = #tpu.dot_dimension_numbers<[1], [0], [0], [1], [0, 0, 1, 1], [], []>} : vector<2x128xbf16>, vector<128x128xbf16>, vector<2x128xf32> -> vector<2x128xf32>
    %107 = arith.truncf %106 : vector<2x128xf32> to vector<2x128xbf16>
    %108 = vector.shape_cast %107 : vector<2x128xbf16> to vector<2x1x128xbf16>
    "tpu.trace_start"() <{level = 10 : i32, message = "bqf,bcf->bqc"}> : () -> ()
    %cst_67 = arith.constant dense<0.000000e+00> : vector<2x1x8xf32>
    %109 = tpu.matmul %108, %1, %cst_67 {dimension_numbers = #tpu.dot_dimension_numbers<[2], [2], [1], [1], [0, 0, 0, 1, 1, 1], [0], [0]>} : vector<2x1x128xbf16>, vector<2x8x128xbf16>, vector<2x1x8xf32> -> vector<2x1x8xf32>
    "tpu.trace_stop"() : () -> ()
    %110 = vector.shape_cast %109 : vector<2x1x8xf32> to vector<2x8xf32>
    %c0_68 = arith.constant 0 : index
    %c0_69 = arith.constant 0 : index
    %111 = vector.load %arg17[%c0_68, %c0_69] : memref<2x768xf32, #tpu.memory_space<vmem>>, vector<2x128xf32>
    tpu.vector_store %arg17[%c0_68, %c0_69], %74 {strides = array<i32>} : memref<2x768xf32, #tpu.memory_space<vmem>>, vector<2x128xf32>,
    %c0_70 = arith.constant 0 : index
    %c128_71 = arith.constant 128 : index
    %112 = vector.load %arg17[%c0_70, %c128_71] : memref<2x768xf32, #tpu.memory_space<vmem>>, vector<2x128xf32>
    tpu.vector_store %arg17[%c0_70, %c128_71], %72 {strides = array<i32>} : memref<2x768xf32, #tpu.memory_space<vmem>>, vector<2x128xf32>,
    %c0_72 = arith.constant 0 : index
    %c256 = arith.constant 256 : index
    %113 = vector.load %arg17[%c0_72, %c256] : memref<2x768xf32, #tpu.memory_space<vmem>>, vector<2x128xf32>
    tpu.vector_store %arg17[%c0_72, %c256], %103 {strides = array<i32>} : memref<2x768xf32, #tpu.memory_space<vmem>>, vector<2x128xf32>,
    %c0_73 = arith.constant 0 : index
    %c384 = arith.constant 384 : index
    %114 = vector.load %arg17[%c0_73, %c384] : memref<2x768xf32, #tpu.memory_space<vmem>>, vector<2x128xf32>
    tpu.vector_store %arg17[%c0_73, %c384], %97 {strides = array<i32>} : memref<2x768xf32, #tpu.memory_space<vmem>>, vector<2x128xf32>,
    %c0_74 = arith.constant 0 : index
    %c512 = arith.constant 512 : index
    %115 = vector.load %arg17[%c0_74, %c512] : memref<2x768xf32, #tpu.memory_space<vmem>>, vector<2x128xf32>
    tpu.vector_store %arg17[%c0_74, %c512], %31 {strides = array<i32>} : memref<2x768xf32, #tpu.memory_space<vmem>>, vector<2x128xf32>,
    %c0_75 = arith.constant 0 : index
    %c640 = arith.constant 640 : index
    %116 = vector.load %arg17[%c0_75, %c640] : memref<2x768xf32, #tpu.memory_space<vmem>>, vector<2x8xf32>
    tpu.vector_store %arg17[%c0_75, %c640], %110 {strides = array<i32>} : memref<2x768xf32, #tpu.memory_space<vmem>>, vector<2x8xf32>,
    return
  }
}

</mosaic_0001>

<bundles_post_ra>
// kernel: attn_decoder_lstm_step.1
= control target key start
LH: loop header
LB: loop body
LE: loop exit
PB: predicated region body
PF: predicated region fallthrough
CT: control target
= control target key end

     0   :  { %s3395_s0 = inlined_call_operand.vmem [shape: f32[2,4], index: 0, kind: input, shape index: {}]   ;;  %s3396_s1 = inlined_call_operand.vmem [shape: bf16[2,36,128], index: 1, kind: input, shape index: {}]   ;;  %s3397_s2 = inlined_call_operand.vmem [shape: bf16[2,8,128], index: 2, kind: input, shape index: {}]   ;;  %s3398_s3 = inlined_call_operand.vmem [shape: f32[2,128], index: 3, kind: input, shape index: {}]   ;;  %s3399_s4 = inlined_call_operand.vmem [shape: f32[2,128], index: 4, kind: input, shape index: {}]   ;;  %s3400_s5 = inlined_call_operand.vmem [shape: bf16[2,8,128], index: 5, kind: input, shape index: {}]   ;;  %s3401_s6 = inlined_call_operand.vmem [shape: f32[2,8], index: 6, kind: input, shape index: {}]   ;;  %s3402_s7 = inlined_call_operand.vmem [shape: f32[4,128], index: 7, kind: input, shape index: {}]   ;;  %s3403_s8 = inlined_call_operand.vmem [shape: f32[1,128], index: 8, kind: input, shape index: {}]   ;;  %s3404_s9 = inlined_call_operand.vmem [shape: bf16[128,128], index: 9, kind: input, shape index: {}]   ;;  %s3405_s10 = inlined_call_operand.hbm [shape: f32[256,512], index: 10, kind: input, shape index: {}]   ;;  %s3406_s11 = inlined_call_operand.vmem [shape: bf16[128,512], index: 11, kind: input, shape index: {}]   ;;  %s3407_s12 = inlined_call_operand.vmem [shape: f32[1,512], index: 12, kind: input, shape index: {}]   ;;  %s3408_s13 = inlined_call_operand.hbm [shape: f32[128,128], index: 13, kind: input, shape index: {}]   ;;  %s3409_s14 = inlined_call_operand.hbm [shape: f32[128,128], index: 14, kind: input, shape index: {}]   ;;  %s3410_s15 = inlined_call_operand.hbm [shape: f32[128,128], index: 15, kind: input, shape index: {}]   ;;  %s3411_s16 = inlined_call_operand.hbm [shape: bf16[128,128], index: 16, kind: input, shape index: {}]   ;;  %s3412_s17 = inlined_call_operand.vmem [shape: f32[2,768], index: 17, kind: output, shape index: {}]  }
   0x1   :  { %3415 = sst [smem:[#allocation14_spill]] %s3395_s0 }
   0x2   :  { %3416 = sst [smem:[#allocation15_spill]] %s3396_s1 }
   0x3   :  { %3417 = sst [smem:[#allocation16_spill]] %s3397_s2 }
   0x4   :  { %22 = vsyncpa [#allocation4], 0 }
   0x5   :  { %23 = vsyncpa [#allocation6], 0 }
   0x6   :  { %24 = vsyncpa [#allocation9], 0  ;;  %s2860_s24 = smov [#allocation5]   ;;  %s2744_s28 = scalar_lea.hbm %s3408_s13, 2048 }
   0x7   :  { %s66_s25 = sshll.u32 %s2860_s24, 4  ;;  %p2745_p0 = scmp.ne.s32.totalorder %s3408_s13, %s2744_s28  ;;  %s67_s25 = int_to_ptr.vmem [resolvable:$true] %s66_s25 }
   0x8   :  { %p2748_p1 = scmp.lt.u32.totalorder %s2744_s28, %s3408_s13 }
   0xa   :  { %p2750_p2 = pnand %p2748_p1, %p2745_p0 }
   0xc   :  { %2753 = shalt.err (!%p2750_p2)
}
   0xd   :  { %s2754_s19 = scalar_lea.vmem %s67_s25, 2048  ;;  %p2759_p4 = scmp.lt.s32.totalorder %s67_s25, %s67_s25 }
   0xe   :  { %p2755_p3 = scmp.ne.s32.totalorder %s67_s25, %s2754_s19  ;;  %p2760_p5 = scmp.lt.s32.totalorder %s2754_s19, %s2754_s19 }
  0x10   :  { %p2761_p6 = por %p2760_p5, %p2759_p4 }
  0x12   :  { %p2762_p7 = pnand %p2761_p6, %p2755_p3 }
  0x14   :  { %2765 = shalt.err (!%p2762_p7)
}
  0x15   :  { %s2861_s1 = smov 128   ;;  %s2862_s20 = smov 8  }
  0x16   :  { %72 = dma.hbm_to_vmem [thread:$0]  %s3408_s13, 2048, %s67_s25, [#allocation6], %s2861_s1, %s2861_s1, %s2862_s20  }
  0x17   :  { %s2863_s23 = smov [#allocation8]   ;;  %s2864_s26 = smov [#allocation3]  }
  0x18   :  { %s90_s24 = sshll.u32 %s2863_s23, 4  ;;  %s50_s27 = sshll.u32 %s2864_s26, 4  ;;  %s91_s24 = int_to_ptr.vmem [resolvable:$true] %s90_s24  ;;  %s51_s27 = int_to_ptr.vmem [resolvable:$true] %s50_s27 }
  0x19   :  { %s2766_s0 = scalar_lea.hbm %s3410_s15, 2048 }
  0x1a   :  { %p2767_p8 = scmp.ne.s32.totalorder %s3410_s15, %s2766_s0  ;;  %p2770_p9 = scmp.lt.u32.totalorder %s2766_s0, %s3410_s15 }
  0x1c   :  { %p2772_p10 = pnand %p2770_p9, %p2767_p8 }
  0x1e   :  { %2775 = shalt.err (!%p2772_p10)
}
  0x1f   :  { %s2776_s13 = scalar_lea.vmem %s91_s24, 2048  ;;  %p2781_p12 = scmp.lt.s32.totalorder %s91_s24, %s91_s24 }
  0x20   :  { %p2777_p11 = scmp.ne.s32.totalorder %s91_s24, %s2776_s13  ;;  %p2782_p13 = scmp.lt.s32.totalorder %s2776_s13, %s2776_s13 }
  0x22   :  { %p2783_p0 = por %p2782_p13, %p2781_p12 }
  0x24   :  { %p2784_p1 = pnand %p2783_p0, %p2777_p11 }
  0x26   :  { %2787 = shalt.err (!%p2784_p1)
}
  0x27   :  { %96 = dma.hbm_to_vmem [thread:$0]  %s3410_s15, 2048, %s91_s24, [#allocation9], %s2861_s1, %s2861_s1, %s2862_s20  }
  0x28   :  { %s2788_s23 = scalar_lea.hbm %s3405_s10, 16384 }
  0x29   :  { %p2789_p2 = scmp.ne.s32.totalorder %s3405_s10, %s2788_s23  ;;  %p2792_p3 = scmp.lt.u32.totalorder %s2788_s23, %s3405_s10 }
  0x2b   :  { %p2794_p4 = pnand %p2792_p3, %p2789_p2 }
  0x2d   :  { %2797 = shalt.err (!%p2794_p4)
}
  0x2e   :  { %s2798_s30 = scalar_lea.vmem %s51_s27, 16384  ;;  %p2803_p6 = scmp.lt.s32.totalorder %s51_s27, %s51_s27 }
  0x2f   :  { %p2799_p5 = scmp.ne.s32.totalorder %s51_s27, %s2798_s30  ;;  %p2804_p7 = scmp.lt.s32.totalorder %s2798_s30, %s2798_s30 }
  0x31   :  { %p2805_p8 = por %p2804_p7, %p2803_p6 }
  0x33   :  { %p2806_p9 = pnand %p2805_p8, %p2799_p5 }
  0x35   :  { %2809 = shalt.err (!%p2806_p9)
}
  0x36   :  { %s2865_s15 = smov 512   ;;  %s2866_s24 = smov 32  }
  0x37   :  { %56 = dma.hbm_to_vmem [thread:$0]  %s3405_s10, 16384, %s51_s27, [#allocation4], %s2865_s15, %s2865_s15, %s2866_s24  }
  0x38   :  { %s2867_s13 = smov [#allocation7]   ;;  %s2868_s21 = smov [#allocation10]  }
  0x39   :  { %s78_s25 = sshll.u32 %s2867_s13, 4  ;;  %s102_s22 = sshll.u32 %s2868_s21, 4  ;;  %s79_s25 = int_to_ptr.vmem [resolvable:$true] %s78_s25  ;;  %s103_s22 = int_to_ptr.vmem [resolvable:$true] %s102_s22 }
  0x3a   :  { %s2810_s26 = scalar_lea.hbm %s3409_s14, 2048 }
  0x3b   :  { %p2811_p10 = scmp.ne.s32.totalorder %s3409_s14, %s2810_s26  ;;  %p2814_p11 = scmp.lt.u32.totalorder %s2810_s26, %s3409_s14 }
  0x3d   :  { %p2816_p12 = pnand %p2814_p11, %p2811_p10 }
  0x3f   :  { %2819 = shalt.err (!%p2816_p12)
}
  0x40   :  { %s2820_s10 = scalar_lea.vmem %s79_s25, 2048  ;;  %p2825_p0 = scmp.lt.s32.totalorder %s79_s25, %s79_s25 }
  0x41   :  { %p2821_p13 = scmp.ne.s32.totalorder %s79_s25, %s2820_s10  ;;  %p2826_p1 = scmp.lt.s32.totalorder %s2820_s10, %s2820_s10 }
  0x43   :  { %p2827_p2 = por %p2826_p1, %p2825_p0 }
  0x45   :  { %p2828_p3 = pnand %p2827_p2, %p2821_p13 }
  0x47   :  { %2831 = shalt.err (!%p2828_p3)
}
  0x48   :  { %84 = dma.hbm_to_vmem [thread:$0]  %s3409_s14, 2048, %s79_s25, [#allocation6], %s2861_s1, %s2861_s1, %s2862_s20  }
  0x49   :  { %s2832_s19 = scalar_lea.hbm %s3411_s16, 1024 }
  0x4a   :  { %p2833_p4 = scmp.ne.s32.totalorder %s3411_s16, %s2832_s19  ;;  %p2836_p5 = scmp.lt.u32.totalorder %s2832_s19, %s3411_s16 }
  0x4c   :  { %p2838_p6 = pnand %p2836_p5, %p2833_p4 }
  0x4e   :  { %2841 = shalt.err (!%p2838_p6)
}
  0x4f   :  { %s2842_s26 = scalar_lea.vmem %s103_s22, 1024  ;;  %p2847_p8 = scmp.lt.s32.totalorder %s103_s22, %s103_s22 }
  0x50   :  { %p2843_p7 = scmp.ne.s32.totalorder %s103_s22, %s2842_s26  ;;  %p2848_p9 = scmp.lt.s32.totalorder %s2842_s26, %s2842_s26 }
  0x52   :  { %p2849_p10 = por %p2848_p9, %p2847_p8 }
  0x54   :  { %p2850_p11 = pnand %p2849_p10, %p2843_p7 }
  0x56   :  { %2853 = shalt.err (!%p2850_p11)
}
  0x57   :  { %s2869_s14 = smov 64   ;;  %s2870_s1 = smov 4  }
  0x58   :  { %108 = dma.hbm_to_vmem [thread:$0]  %s3411_s16, 1024, %s103_s22, [#allocation9], %s2869_s14, %s2869_s14, %s2870_s1  }
  0x59   :  { %2854 = dma.done.wait [#allocation4], 16384  }
  0x5a   :  { %2855 = vsyncadd [#allocation4], 4294950912 }
  0x5b   :  { %2856 = dma.done.wait [#allocation6], 4096  }
  0x5c   :  { %2857 = vsyncadd [#allocation6], 4294963200 }
  0x5d   :  { %2858 = dma.done.wait [#allocation9], 3072  }
  0x5e   :  { %2859 = vsyncadd [#allocation9], 4294964224  ;;  %v2871_v0 = vmov 0.0   ;;  %vm2872_vm0 = vmmov 0   ;;  %v2644_v1 = vld [vmem:[%s3404_s9] sm:$0xff]   ;;  %v2645_v2 = vld [vmem:[%s3404_s9 + $0x8] sm:$0xff]   ;;  %v340_v23 = vlaneseq }
  0x5f   :  { %2204 = vmatprep.subr.bf16.mxu1 %v2871_v0  ;;  %2220 = vmatprep.mubr.msk.bf16.mxu1 %vm2872_vm0, %v2871_v0  ;;  %v2646_v3 = vld [vmem:[%s3404_s9 + $0x10] sm:$0xff]   ;;  %vm155_vm1 = vcmask 1043456   ;;  %vm151_vm2 = vcmask 31744   ;;  %v139_v4 = vld [vmem:[%s3398_s3] sm:$0x3]  ;;  %s3418_s13 = sld [smem:[#allocation14_spill]] }
  0x60   :  { %2199 = vmatprep.subr.mxu0 %v2871_v0  ;;  %2201 = vmatprep.mubr.msk.f32.mxu0 %vm2872_vm0, %v2871_v0  ;;  %v143_v5 = vld [vmem:[%s3402_s7] sm:$0xf]  ;;  %v2647_v7 = vld [vmem:[%s3404_s9 + $0x18] sm:$0xff]   ;;  %597 = vst [vmem:[#allocation2 + $0x2] sm:$0x3] %v139_v4  ;;  %s3419_s3 = sld [smem:[#allocation15_spill]]  ;;  %v230_v14 = vpack.c.bf16 %v139_v4, %v139_v4 }
  0x61   :  { %2205 = vmatpush3.bf16.msra.mxu1 %v2644_v1  ;;  %2200 = vmatpush3.msk.msra.mxu0 %vm155_vm1, %v143_v5  ;;  %v2648_v9 = vld [vmem:[%s3404_s9 + $0x20] sm:$0xff]   ;;  %v2649_v10 = vld [vmem:[%s3404_s9 + $0x28] sm:$0xff]   ;;  %v2650_v12 = vld [vmem:[%s3404_s9 + $0x30] sm:$0xff]   ;;  %v2873_v21 = vmov 1966171168   ;;  %v3109_v25 = vshrl.u32 %v340_v23, 7 }
  0x62   :  { %2206 = vmatprep.subr.bf16.mxu1 %v2871_v0  ;;  %2224 = vmatprep.subr.bf16.mxu0 %v2871_v0  ;;  %v2651_v13 = vld [vmem:[%s3404_s9 + $0x38] sm:$0xff]   ;;  %v2034_v16 = vld [vmem:[%s3403_s8] ss:$0 sm:$0xff]  ;;  %v338_v22 = vunpack.c.l.s4 %v2873_v21  ;;  %vm477_vm3 = vcmask 286720   ;;  %vm506_vm4 = vcmask 1041408   ;;  %vm502_vm5 = vcmask 293888  }
  0x63   :  { %v3117_v34 = vsub.s32 0, %v3109_v25  ;;  %v2673_v21 = vld [vmem:[%s3406_s11 + $0x48] ss:$16 sps:$4 sm:$0xff]   ;;  %v2681_v23 = vld [vmem:[%s3406_s11 + $0x6c] ss:$16 sps:$4 sm:$0xff]   ;;  %vm766_vm6 = vcmask 1041409  }
  0x64   :  { %v339_v24 = vunpack.c.0.s8 %v338_v22  ;;  %v2678_v22 = vld [vmem:[%s3406_s11 + $0x64] ss:$16 sps:$4 sm:$0xff]   ;;  %vm1968_vm7 = vcmask 1043459   ;;  %vm1970_vm8 = vcmask 1045509   ;;  %vm1972_vm9 = vcmask 1047559   ;;  %s3420_s14 = sld [smem:[#allocation16_spill]] }
  0x65   :  { %2207 = vmatpush3.bf16.msra.mxu1 %v2645_v2  ;;  %v142_v6 = vld [vmem:[%s3418_s13] sm:$0x3]  ;;  %vm1434_vm11 = vcmask 57344   ;;  %vm1459_vm13 = vcmask 64512   ;;  %vm2025_vm14 = vcmask 58368  }
  0x66   :  { %2208 = vmatprep.subr.bf16.mxu1 %v2871_v0  ;;  %2202 = vmatmul.mubr.msk.f32.vlgmr.msra.gmra.mrb[0].mxu0 %vm151_vm2, %v142_v6  ;;  %v2652_v8 = vld [vmem:[%s3419_s3] sm:$0xff]   ;;  %v2653_v11 = vld [vmem:[%s3419_s3 + $0x8] sm:$0xff]   ;;  %v3102_v15 = vld [vmem:[%s3419_s3 + $0x10] ss:$0 sps:$4 sm:$0x33]   ;;  %v3112_v26 = vsub.s32 %v339_v24, %v3109_v25 }
  0x67   :  { %2230 = vmatprep.mubr.msk.bf16.mxu0 %vm2872_vm0, %v2871_v0  ;;  %v2655_v36 = vld [vmem:[%s3419_s3 + $0x14] sm:$0xff]   ;;  %v2656_v38 = vld [vmem:[%s3419_s3 + $0x1c] sm:$0xff]   ;;  %v2657_v39 = vld [vmem:[%s3419_s3 + $0x24] ss:$0 sps:$4 sm:$0x33]   ;;  %v508_v63 = vsel %vm506_vm4, %v3102_v15, 0 }
  0x68   :  { %2225 = vmatpush3.bf16.xpose.msra.mxu0 %v2652_v8  ;;  %v554_v5 = vsel %vm506_vm4, %v2657_v39, 0  ;;  %v2676_v24 = vld [vmem:[%s3406_s11 + $0x60] ss:$16 sps:$4 sm:$0xff]  }
  0x69   :  { %2209 = vmatpush3.bf16.msra.mxu1 %v2646_v3  ;;  %2226 = vmatprep.subr.bf16.mxu0 %v2871_v0 }
  0x6a   :  { %2210 = vmatprep.subr.bf16.mxu1 %v2871_v0 }
  0x6d   :  { %2211 = vmatpush3.bf16.msra.mxu1 %v2647_v7 }
  0x6e   :  { %2212 = vmatprep.subr.bf16.mxu1 %v2871_v0 }
  0x70   :  { %2227 = vmatpush3.bf16.xpose.msra.mxu0 %v2653_v11 }
  0x71   :  { %2213 = vmatpush3.bf16.msra.mxu1 %v2648_v9  ;;  %2228 = vmatprep.subr.bf16.mxu0 %v2871_v0 }
  0x72   :  { %2214 = vmatprep.subr.bf16.mxu1 %v2871_v0 }
  0x75   :  { %2215 = vmatpush3.bf16.msra.mxu1 %v2649_v10  ;;  %v2660_v10 = vld [vmem:[%s3406_s11 + $0x4] ss:$16 sps:$4 sm:$0xff]  }
  0x76   :  { %2216 = vmatprep.subr.bf16.mxu1 %v2871_v0 }
  0x78   :  { %2229 = vmatpush3.bf16.xpose.msra.mxu0 %v3102_v15  ;;  %v2666_v15 = vld [vmem:[%s3406_s11 + $0x24] ss:$16 sps:$4 sm:$0xff]  }
  0x79   :  { %2217 = vmatpush3.bf16.msra.mxu1 %v2650_v12  ;;  %2234 = vmatprep.subr.bf16.mxu0 %v2871_v0  ;;  %v2658_v12 = vld [vmem:[%s3406_s11] ss:$16 sps:$4 sm:$0xff]  }
  0x7a   :  { %2218 = vmatprep.subr.bf16.mxu1 %v2871_v0 }
  0x7d   :  { %2219 = vmatpush3.bf16.msra.mxu1 %v2651_v13  ;;  %v2661_v13 = vld [vmem:[%s3406_s11 + $0x8] ss:$16 sps:$4 sm:$0xff]  }
  0x7e   :  { %2244 = vmatprep.subr.bf16.mxu1 %v2871_v0 }
  0x80   :  { %2221 = vmatmul.mubr.bf16.vlgmr.msra.gmra.mrb[0].mxu1 %v230_v14  ;;  %v2664_v14 = vld [vmem:[%s3406_s11 + $0x20] ss:$16 sps:$4 sm:$0xff]  }
  0x81   :  { %2245 = vmatpush3.bf16.msra.mxu1 %v2652_v8  ;;  %2250 = vmatprep.mubr.msk.bf16.mxu1 %vm2872_vm0, %v2871_v0 }
  0x82   :  { %2246 = vmatprep.subr.bf16.mxu1 %v2871_v0 }
  0x85   :  { %2247 = vmatpush3.bf16.msra.mxu1 %v2653_v11  ;;  %v2663_v11 = vld [vmem:[%s3406_s11 + $0xc] ss:$16 sps:$4 sm:$0xff]  }
  0x86   :  { %2248 = vmatprep.subr.bf16.mxu1 %v2871_v0 }
  0x89   :  { %2249 = vmatpush3.bf16.msra.mxu1 %v508_v63 }
  0x8a   :  { %2254 = vmatprep.subr.bf16.mxu1 %v2871_v0 }
 0x139   :  { %v225_v17 = vpop.f32.mrb[0].mxu0 }
 0x13a   :  { %v226_v18 = vadd.f32 %v2034_v16, %v225_v17  ;;  %v2203_v19 = vpop.f32.mrb[1].mxu0  ;;  %v2667_v16 = vld [vmem:[%s3406_s11 + $0x28] ss:$16 sps:$4 sm:$0xff]   ;;  %v2669_v17 = vld [vmem:[%s3406_s11 + $0x2c] ss:$16 sps:$4 sm:$0xff]  }
 0x13b   :  { %v2675_v19 = vld [vmem:[%s3406_s11 + $0x4c] ss:$16 sps:$4 sm:$0xff]  }
 0x13c   :  { %2714 = vtanh.f32 %v226_v18  ;;  %v2672_v18 = vld [vmem:[%s3406_s11 + $0x44] ss:$16 sps:$4 sm:$0xff]  }
 0x146   :  { %v2715_v20 = vpop.eup %2714 }
 0x147   :  { %596 = vst [vmem:[#allocation2] sm:$0x3] %v2715_v20  ;;  %v2670_v20 = vld [vmem:[%s3406_s11 + $0x40] ss:$16 sps:$4 sm:$0xff]  }
 0x153   :  { %v329_v27 = vpop.f32.mrb[0].mxu1 }
 0x154   :  { %v335_v28 = vpack.c.bf16 %v329_v27, %v329_v27  ;;  %v2222_v29 = vpop.f32.mrb[1].mxu1  ;;  %v2679_v27 = vld [vmem:[%s3406_s11 + $0x68] ss:$16 sps:$4 sm:$0xff]  }
 0x155   :  { %v332_v30 = vpop.f32.mrb[2].mxu1  ;;  %v2687_v29 = vld [vmem:[%s3406_s11 + $0x8c] ss:$16 sps:$4 sm:$0xff]  }
 0x156   :  { %v343_v31 = vrot.slane %v335_v28, %v3112_v26  ;;  %v2223_v32 = vpop.f32.mrb[3].mxu1  ;;  %v2684_v28 = vld [vmem:[%s3406_s11 + $0x84] ss:$16 sps:$4 sm:$0xff]   ;;  %v2682_v30 = vld [vmem:[%s3406_s11 + $0x80] ss:$16 sps:$4 sm:$0xff]  }
 0x157   :  { %v2690_v32 = vld [vmem:[%s3406_s11 + $0xa4] ss:$16 sps:$4 sm:$0xff]  }
 0x158   :  { %v350_v33 = vrot.slane %v343_v31, %v3112_v26  ;;  %v2685_v31 = vld [vmem:[%s3406_s11 + $0x88] ss:$16 sps:$4 sm:$0xff]  }
 0x15a   :  { %v2045_v35 = vpack.i.b16 %v350_v33, %v350_v33  ;;  %v352_v40 = vunpack.i.h.s16 %v350_v33  ;;  %v2693_v33 = vld [vmem:[%s3406_s11 + $0xac] ss:$16 sps:$4 sm:$0xff]  }
 0x15c   :  { %v357_v37 = vrot.slane %v2045_v35, %v3117_v34  ;;  %v415_v41 = vpack.i.b16 %v352_v40, %v352_v40  ;;  %v2688_v35 = vld [vmem:[%s3406_s11 + $0xa0] ss:$16 sps:$4 sm:$0xff]   ;;  %v2697_v40 = vld [vmem:[%s3406_s11 + $0xc8] ss:$16 sps:$4 sm:$0xff]  }
 0x15e   :  { %2231 = vmatmul.mubr.bf16.vlgmr.msra.gmra.mrb[4].mxu0 %v357_v37  ;;  %v419_v42 = vrot.slane %v415_v41, %v3117_v34  ;;  %v2696_v37 = vld [vmem:[%s3406_s11 + $0xc4] ss:$16 sps:$4 sm:$0xff]  }
 0x15f   :  { %2235 = vmatpush3.bf16.xpose.msra.mxu0 %v2655_v36  ;;  %2240 = vmatprep.mubr.msk.bf16.mxu0 %vm2872_vm0, %v2871_v0  ;;  %v2702_v41 = vld [vmem:[%s3406_s11 + $0xe4] ss:$16 sps:$4 sm:$0xff]  }
 0x160   :  { %2236 = vmatprep.subr.bf16.mxu0 %v2871_v0 }
 0x167   :  { %2237 = vmatpush3.bf16.xpose.msra.mxu0 %v2656_v38 }
 0x168   :  { %2238 = vmatprep.subr.bf16.mxu0 %v2871_v0 }
 0x16f   :  { %2239 = vmatpush3.bf16.xpose.msra.mxu0 %v2657_v39  ;;  %v2694_v39 = vld [vmem:[%s3406_s11 + $0xc0] ss:$16 sps:$4 sm:$0xff]  }
 0x170   :  { %930 = vmatprep.subr.bf16.mxu0 %v2660_v10  ;;  %v605_v10 = vld [vmem:[#allocation3 + $0x30] sm:$0xff] }
 0x176   :  { %2241 = vmatmul.mubr.bf16.vlgmr.msra.gmra.mrb[8].mxu0 %v419_v42  ;;  %v2705_v42 = vld [vmem:[%s3406_s11 + $0xec] ss:$16 sps:$4 sm:$0xff]  }
 0x177   :  { %931 = vmatpush1.bf16.msra.mxu0 %v2658_v12 }
 0x178   :  { %932 = vmatprep.subr.bf16.mxu0 %v2666_v15 }
 0x17b   :  { %933 = vmatpush1.bf16.msra.mxu0 %v2664_v14  ;;  %v608_v14 = vld [vmem:[#allocation3 + $0x48] sm:$0xff] }
 0x17c   :  { %934 = vmatprep.subr.bf16.mxu0 %v2672_v18  ;;  %v614_v18 = vld [vmem:[#allocation3 + $0x78] sm:$0xff] }
 0x17f   :  { %935 = vmatpush1.bf16.msra.mxu0 %v2670_v20 }
 0x180   :  { %936 = vmatprep.subr.bf16.mxu0 %v2678_v22 }
 0x183   :  { %937 = vmatpush1.bf16.msra.mxu0 %v2676_v24  ;;  %v607_v24 = vld [vmem:[#allocation3 + $0x40] sm:$0xff] }
 0x184   :  { %938 = vmatprep.subr.bf16.mxu0 %v2684_v28 }
 0x187   :  { %939 = vmatpush1.bf16.msra.mxu0 %v2682_v30  ;;  %v609_v30 = vld [vmem:[#allocation3 + $0x50] sm:$0xff] }
 0x188   :  { %940 = vmatprep.subr.bf16.mxu0 %v2690_v32  ;;  %v616_v32 = vld [vmem:[#allocation3 + $0x88] sm:$0xff] }
 0x18b   :  { %941 = vmatpush1.bf16.msra.mxu0 %v2688_v35 }
 0x18c   :  { %942 = vmatprep.subr.bf16.mxu0 %v2696_v37  ;;  %v618_v37 = vld [vmem:[#allocation3 + $0x98] sm:$0xff] }
 0x18f   :  { %943 = vmatpush1.bf16.msra.mxu0 %v2694_v39 }
 0x190   :  { %944 = vmatprep.subr.bf16.mxu0 %v2702_v41 }
 0x231   :  { %v409_v43 = vpop.f32.mrb[4].mxu0 }
 0x232   :  { %v2232_v44 = vpop.f32.mrb[5].mxu0  ;;  %v478_v45 = vsel %vm477_vm3, %v409_v43, -inf }
 0x233   :  { %479 = vmax.xlane.f32.xlu0 %v478_v45  ;;  %v412_v46 = vpop.f32.mrb[6].mxu0  ;;  %v2703_v44 = vld [vmem:[%s3406_s11 + $0xe8] ss:$16 sps:$4 sm:$0xff]   ;;  %v600_v45 = vld [vmem:[#allocation3 + $0x8] sm:$0xff] }
 0x234   :  { %v2233_v47 = vpop.f32.mrb[7].mxu0  ;;  %v604_v46 = vld [vmem:[#allocation3 + $0x28] sm:$0xff] }
 0x235   :  { %v602_v47 = vld [vmem:[#allocation3 + $0x18] sm:$0xff] }
 0x249   :  { %v471_v48 = vpop.f32.mrb[8].mxu0 }
 0x24a   :  { %v2242_v49 = vpop.f32.mrb[9].mxu0  ;;  %v481_v50 = vsel %vm477_vm3, %v471_v48, -inf }
 0x24b   :  { %482 = vmax.xlane.f32.xlu0 %v481_v50  ;;  %v474_v51 = vpop.f32.mrb[10].mxu0  ;;  %v606_v49 = vld [vmem:[#allocation3 + $0x38] sm:$0xff] }
 0x24c   :  { %v2243_v52 = vpop.f32.mrb[11].mxu0  ;;  %v2489_v50 = vpack.c.bf16 %v606_v49, %v602_v47  ;;  %v2874_v51 = vmov 0   ;;  %v621_v47 = vld [vmem:[#allocation3 + $0xb0] sm:$0xff]  ;;  %v628_v49 = vld [vmem:[#allocation3 + $0xe8] sm:$0xff] }
 0x24d   :  { %962 = vmatprep.mubr.bf16.mxu0 %v2874_v51 }
 0x2c0   :  { %v480_v53 = vpop.xlane.xlu0 %479 }
 0x2c1   :  { %v484_v54 = vsub.f32 %v409_v43, %v480_v53  ;;  %v2700_v43 = vld [vmem:[%s3406_s11 + $0xe0] ss:$16 sps:$4 sm:$0xff]  }
 0x2c2   :  { %945 = vmatpush1.bf16.msra.mxu0 %v2700_v43  ;;  %v619_v43 = vld [vmem:[#allocation3 + $0xa0] sm:$0xff] }
 0x2c3   :  { %v486_v55 = vmul.f32 1.442695, %v484_v54 }
 0x2c5   :  { %2716 = vpow2.f32 %v486_v55 }
 0x2cf   :  { %v2717_v56 = vpop.eup %2716 }
 0x2d0   :  { %v490_v57 = vsel %vm477_vm3, %v2717_v56, 0.0 }
 0x2d1   :  { %491 = vadd.xlane.f32.xlu1 %v490_v57 }
 0x2d8   :  { %v483_v58 = vpop.xlane.xlu0 %482 }
 0x2d9   :  { %v485_v59 = vsub.f32 %v471_v48, %v483_v58  ;;  %v2425_v48 = vpack.c.bf16 %v604_v46, %v600_v45  ;;  %v617_v46 = vld [vmem:[#allocation3 + $0x90] sm:$0xff] }
 0x2db   :  { %v488_v60 = vmul.f32 1.442695, %v485_v59  ;;  %2426 = vmatprep.subr.bf16.mxu0 %v2425_v48  ;;  %v624_v48 = vld [vmem:[#allocation3 + $0xc8] sm:$0xff] }
 0x2dd   :  { %2718 = vpow2.f32 %v488_v60 }
 0x2e7   :  { %v2719_v61 = vpop.eup %2718 }
 0x2e8   :  { %v493_v62 = vsel %vm477_vm3, %v2719_v61, 0.0 }
 0x2e9   :  { %494 = vadd.xlane.f32.xlu1 %v493_v62 }
 0x35e   :  { %v492_v1 = vpop.xlane.xlu1 %491 }
 0x35f   :  { %2720 = vrcp.f32 %v492_v1 }
 0x369   :  { %v2721_v2 = vpop.eup %2720 }
 0x36a   :  { %v498_v3 = vmul.f32 %v2721_v2, %v2717_v56  ;;  %v2875_v56 = vmov 1983009808  }
 0x36b   :  { %v1949_v57 = vunpack.c.l.s4 %v2875_v56  ;;  %v2437_v56 = vpack.c.bf16 %v628_v49, %v624_v48  ;;  %v657_v48 = vld [vmem:[#allocation3 + $0x1d0] sm:$0xff] }
 0x36c   :  { %v500_v4 = vpack.c.bf16 %v498_v3, %v498_v3  ;;  %v661_v49 = vld [vmem:[#allocation3 + $0x1f0] sm:$0xff] }
 0x36d   :  { %v1950_v58 = vunpack.c.0.s8 %v1949_v57 }
 0x36e   :  { %2251 = vmatmul.mubr.msk.bf16.vlgmr.msra.gmra.mrb[4].mxu1 %vm502_vm5, %v500_v4 }
 0x36f   :  { %2255 = vmatpush3.bf16.msra.mxu1 %v2655_v36  ;;  %2260 = vmatprep.mubr.msk.bf16.mxu1 %vm2872_vm0, %v2871_v0  ;;  %v2691_v36 = vld [vmem:[%s3406_s11 + $0xa8] ss:$16 sps:$4 sm:$0xff]   ;;  %v3243_v59 = vsub.s32 %v1950_v58, %v3109_v25 }
 0x370   :  { %2256 = vmatprep.subr.bf16.mxu1 %v2871_v0  ;;  %v625_v58 = vld [vmem:[#allocation3 + $0xd0] sm:$0xff] }
 0x373   :  { %2257 = vmatpush3.bf16.msra.mxu1 %v2656_v38  ;;  %v2699_v38 = vld [vmem:[%s3406_s11 + $0xcc] ss:$16 sps:$4 sm:$0xff]  }
 0x374   :  { %2258 = vmatprep.subr.bf16.mxu1 %v2871_v0 }
 0x376   :  { %v495_v6 = vpop.xlane.xlu1 %494 }
 0x377   :  { %2722 = vrcp.f32 %v495_v6  ;;  %2259 = vmatpush3.bf16.msra.mxu1 %v554_v5 }
 0x378   :  { %971 = vmatprep.subr.bf16.mxu1 %v2663_v11 }
 0x381   :  { %v2723_v7 = vpop.eup %2722 }
 0x382   :  { %v499_v8 = vmul.f32 %v2723_v7, %v2719_v61  ;;  %v599_v7 = vld [vmem:[#allocation3] sm:$0xff] }
 0x384   :  { %v501_v9 = vpack.c.bf16 %v499_v8, %v499_v8  ;;  %v603_v8 = vld [vmem:[#allocation3 + $0x20] sm:$0xff] }
 0x386   :  { %2261 = vmatmul.mubr.msk.bf16.vlgmr.msra.gmra.mrb[8].mxu1 %vm502_vm5, %v501_v9  ;;  %v601_v9 = vld [vmem:[#allocation3 + $0x10] sm:$0xff] }
 0x387   :  { %972 = vmatpush1.bf16.msra.mxu1 %v2661_v13  ;;  %1003 = vmatprep.mubr.bf16.mxu1 %v2874_v51  ;;  %v2491_v22 = vpack.c.bf16 %v605_v10, %v601_v9  ;;  %v630_v51 = vld [vmem:[#allocation3 + $0xf8] sm:$0xff]  ;;  %v637_v9 = vld [vmem:[#allocation3 + $0x130] sm:$0xff]  ;;  %v640_v10 = vld [vmem:[#allocation3 + $0x148] sm:$0xff] }
 0x388   :  { %973 = vmatprep.subr.bf16.mxu1 %v2669_v17  ;;  %v610_v17 = vld [vmem:[#allocation3 + $0x58] sm:$0xff] }
 0x389   :  { %v2493_v35 = vpack.c.bf16 %v614_v18, %v610_v17  ;;  %v643_v17 = vld [vmem:[#allocation3 + $0x160] sm:$0xff] }
 0x38b   :  { %974 = vmatpush1.bf16.msra.mxu1 %v2667_v16  ;;  %v612_v16 = vld [vmem:[#allocation3 + $0x68] sm:$0xff] }
 0x38c   :  { %975 = vmatprep.subr.bf16.mxu1 %v2675_v19 }
 0x38f   :  { %976 = vmatpush1.bf16.msra.mxu1 %v2673_v21  ;;  %v2427_v21 = vpack.c.bf16 %v603_v8, %v599_v7  ;;  %v633_v8 = vld [vmem:[#allocation3 + $0x110] sm:$0xff] }
 0x390   :  { %977 = vmatprep.subr.bf16.mxu1 %v2681_v23  ;;  %v3251_v23 = vld.sshfl [vmem:[#allocation2] sm:$0x33 pattern:$0x76325410] }
 0x391   :  { %v1020_v39 = vcombine.high %v3251_v23, %v3251_v23 }
 0x393   :  { %978 = vmatpush1.bf16.msra.mxu1 %v2679_v27  ;;  %v611_v27 = vld [vmem:[#allocation3 + $0x60] sm:$0xff] }
 0x394   :  { %979 = vmatprep.subr.bf16.mxu1 %v2687_v29 }
 0x397   :  { %980 = vmatpush1.bf16.msra.mxu1 %v2685_v31  ;;  %v613_v31 = vld [vmem:[#allocation3 + $0x70] sm:$0xff] }
 0x398   :  { %981 = vmatprep.subr.bf16.mxu1 %v2693_v33  ;;  %v2429_v33 = vpack.c.bf16 %v612_v16, %v608_v14  ;;  %v2495_v41 = vpack.c.bf16 %v613_v31, %v609_v30  ;;  %v639_v16 = vld [vmem:[#allocation3 + $0x140] sm:$0xff] }
 0x399   :  { %v647_v31 = vld [vmem:[#allocation3 + $0x180] sm:$0xff] }
 0x39b   :  { %982 = vmatpush1.bf16.msra.mxu1 %v2691_v36  ;;  %v620_v36 = vld [vmem:[#allocation3 + $0xa8] sm:$0xff] }
 0x39c   :  { %983 = vmatprep.subr.bf16.mxu1 %v2699_v38  ;;  %v622_v38 = vld [vmem:[#allocation3 + $0xb8] sm:$0xff] }
 0x39d   :  { %v2497_v45 = vpack.c.bf16 %v622_v38, %v618_v37  ;;  %v653_v37 = vld [vmem:[#allocation3 + $0x1b0] sm:$0xff]  ;;  %v656_v38 = vld [vmem:[#allocation3 + $0x1c8] sm:$0xff] }
 0x39f   :  { %984 = vmatpush1.bf16.msra.mxu1 %v2697_v40  ;;  %v2431_v40 = vpack.c.bf16 %v611_v27, %v607_v24  ;;  %v652_v24 = vld [vmem:[#allocation3 + $0x1a8] sm:$0xff]  ;;  %v650_v27 = vld [vmem:[#allocation3 + $0x198] sm:$0xff] }
 0x3a0   :  { %985 = vmatprep.subr.bf16.mxu1 %v2705_v42  ;;  %v615_v42 = vld [vmem:[#allocation3 + $0x80] sm:$0xff] }
 0x3a3   :  { %986 = vmatpush1.bf16.msra.mxu1 %v2703_v44  ;;  %v2433_v44 = vpack.c.bf16 %v620_v36, %v616_v32  ;;  %v651_v32 = vld [vmem:[#allocation3 + $0x1a0] sm:$0xff]  ;;  %v649_v36 = vld [vmem:[#allocation3 + $0x190] sm:$0xff] }
 0x3a4   :  { %2490 = vmatprep.subr.bf16.mxu1 %v2489_v50  ;;  %v626_v50 = vld [vmem:[#allocation3 + $0xd8] sm:$0xff] }
 0x3a5   :  { %v2501_v57 = vpack.c.bf16 %v630_v51, %v626_v50  ;;  %v664_v50 = vld [vmem:[#allocation3 + $0x208] sm:$0xff] }
 0x3a6   :  { %v668_v51 = vld [vmem:[#allocation3 + $0x228] sm:$0xff] }
 0x441   :  { %v544_v52 = vpop.f32.mrb[4].mxu1 }
 0x442   :  { %v2252_v53 = vpop.f32.mrb[5].mxu1  ;;  %v727_v61 = vpack.c.bf16 %v544_v52, %v544_v52  ;;  %v1984_v3 = vrot.slane %v544_v52, %v3243_v59  ;;  %v2435_v52 = vpack.c.bf16 %v619_v43, %v615_v42  ;;  %v2451_v42 = vpack.c.bf16 %v651_v32, %v647_v31 }
 0x443   :  { %v547_v54 = vpop.f32.mrb[6].mxu1  ;;  %v2499_v53 = vpack.c.bf16 %v621_v47, %v617_v46  ;;  %v2515_v43 = vpack.c.bf16 %v653_v37, %v649_v36 }
 0x444   :  { %v2253_v55 = vpop.f32.mrb[7].mxu1  ;;  %v763_v11 = vunpack.c.l.b16 %v727_v61  ;;  %v623_v54 = vld [vmem:[#allocation3 + $0xc0] sm:$0xff]  ;;  %v632_v61 = vld [vmem:[#allocation3 + $0x108] sm:$0xff] }
 0x445   :  { %v627_v55 = vld [vmem:[#allocation3 + $0xe0] sm:$0xff] }
 0x459   :  { %v590_v60 = vpop.f32.mrb[8].mxu1 }
 0x45a   :  { %v728_v62 = vpack.c.bf16 %v590_v60, %v590_v60  ;;  %v1991_v63 = vrot.slane %v590_v60, %v3243_v59  ;;  %v2262_v1 = vpop.f32.mrb[9].mxu1  ;;  %v629_v60 = vld [vmem:[#allocation3 + $0xf0] sm:$0xff] }
 0x45b   :  { %v593_v2 = vpop.f32.mrb[10].mxu1  ;;  %v638_v1 = vld [vmem:[#allocation3 + $0x138] sm:$0xff] }
 0x45c   :  { %v764_v4 = vunpack.c.l.b16 %v728_v62  ;;  %v1994_v5 = vrot.slane %v1991_v63, 7  ;;  %v2263_v6 = vpop.f32.mrb[11].mxu1  ;;  %v636_v62 = vld [vmem:[#allocation3 + $0x128] sm:$0xff]  ;;  %v634_v63 = vld [vmem:[#allocation3 + $0x118] sm:$0xff]  ;;  %v2439_v2 = vpack.c.bf16 %v627_v55, %v623_v54  ;;  %v2519_v55 = vpack.c.bf16 %v661_v49, %v657_v48 }
 0x45d   :  { %v2441_v6 = vpack.c.bf16 %v636_v62, %v632_v61  ;;  %v2505_v7 = vpack.c.bf16 %v638_v1, %v634_v63  ;;  %v665_v61 = vld [vmem:[#allocation3 + $0x210] sm:$0xff]  ;;  %v672_v63 = vld [vmem:[#allocation3 + $0x248] sm:$0xff] }
 0x45e   :  { %v765_v12 = vrot.slane %v764_v4, 7  ;;  %v1995_v13 = vsel %vm766_vm6, %v1994_v5, %v1984_v3  ;;  %v2503_v3 = vpack.c.bf16 %v629_v60, %v625_v58  ;;  %v631_v4 = vld [vmem:[#allocation3 + $0x100] sm:$0xff]  ;;  %v2457_v58 = vpack.c.bf16 %v668_v51, %v664_v50  ;;  %v669_v62 = vld [vmem:[#allocation3 + $0x230] sm:$0xff]  ;;  %v676_v1 = vld [vmem:[#allocation3 + $0x268] sm:$0xff] }
 0x45f   :  { %v1996_v15 = vsel %vm1968_vm7, %v1994_v5, %v1995_v13  ;;  %v646_v13 = vld [vmem:[#allocation3 + $0x178] sm:$0xff]  ;;  %v697_v50 = vld [vmem:[#allocation3 + $0x310] sm:$0xff] }
 0x460   :  { %v767_v19 = vsel %vm766_vm6, %v765_v12, %v763_v11  ;;  %v1997_v20 = vsel %vm1970_vm8, %v1994_v5, %v1996_v15  ;;  %v644_v11 = vld [vmem:[#allocation3 + $0x168] sm:$0xff]  ;;  %v642_v12 = vld [vmem:[#allocation3 + $0x158] sm:$0xff]  ;;  %v2507_v15 = vpack.c.bf16 %v637_v9, %v633_v8  ;;  %v2461_v8 = vpack.c.bf16 %v676_v1, %v672_v63  ;;  %v701_v51 = vld [vmem:[#allocation3 + $0x330] sm:$0xff] }
 0x461   :  { %v1998_v28 = vsel %vm1972_vm9, %v1994_v5, %v1997_v20  ;;  %v768_v29 = vpack.c.b16 %v767_v19, %v767_v19  ;;  %v635_v5 = vld [vmem:[#allocation3 + $0x120] sm:$0xff]  ;;  %v2445_v18 = vpack.c.bf16 %v644_v11, %v640_v10  ;;  %v2509_v19 = vpack.c.bf16 %v646_v13, %v642_v12  ;;  %v641_v20 = vld [vmem:[#allocation3 + $0x150] sm:$0xff]  ;;  %v680_v12 = vld [vmem:[#allocation3 + $0x288] sm:$0xff] }
 0x462   :  { %2000 = vst [vmem:[%s3412_s17 + $0x8] sm:$0x3] %v1998_v28  ;;  %v2443_v14 = vpack.c.bf16 %v635_v5, %v631_v4  ;;  %v654_v28 = vld [vmem:[#allocation3 + $0x1b8] sm:$0xff]  ;;  %v2523_v5 = vpack.c.bf16 %v669_v62, %v665_v61  ;;  %v673_v10 = vld [vmem:[#allocation3 + $0x250] sm:$0xff]  ;;  %v684_v13 = vld [vmem:[#allocation3 + $0x2a8] sm:$0xff] }
 0x463   :  { %963 = vmatmul.mubr.bf16.vlgmr.msra.gmra.mrb[12].mxu0 %v768_v29  ;;  %1004 = vmatmul.mubr.bf16.vlgmr.msra.gmra.mrb[12].mxu1 %v768_v29  ;;  %v2447_v29 = vpack.c.bf16 %v643_v17, %v639_v16  ;;  %v677_v11 = vld [vmem:[#allocation3 + $0x270] sm:$0xff] }
 0x464   :  { %2428 = vmatpush1.bf16.msra.mxu0 %v2427_v21  ;;  %2492 = vmatpush1.bf16.msra.mxu1 %v2491_v22  ;;  %v645_v21 = vld [vmem:[#allocation3 + $0x170] sm:$0xff]  ;;  %v648_v22 = vld [vmem:[#allocation3 + $0x188] sm:$0xff]  ;;  %v2527_v17 = vpack.c.bf16 %v677_v11, %v673_v10 }
 0x465   :  { %1087 = vmatprep.mubr.f32.mxu0 %v1020_v39  ;;  %1158 = vmatprep.mubr.f32.mxu1 %v1020_v39  ;;  %v2511_v30 = vpack.c.bf16 %v645_v21, %v641_v20  ;;  %v660_v39 = vld [vmem:[#allocation3 + $0x1e8] sm:$0xff]  ;;  %v2465_v20 = vpack.c.bf16 %v684_v13, %v680_v12  ;;  %v705_v63 = vld [vmem:[#allocation3 + $0x350] sm:$0xff] }
 0x466   :  { %2430 = vmatprep.subr.bf16.mxu0 %v2429_v33  ;;  %2494 = vmatprep.subr.bf16.mxu1 %v2493_v35  ;;  %v2449_v33 = vpack.c.bf16 %v652_v24, %v648_v22  ;;  %v2513_v35 = vpack.c.bf16 %v654_v28, %v650_v27  ;;  %v2453_v46 = vpack.c.bf16 %v660_v39, %v656_v38  ;;  %v681_v22 = vld [vmem:[#allocation3 + $0x290] sm:$0xff]  ;;  %v688_v27 = vld [vmem:[#allocation3 + $0x2c8] sm:$0xff] }
 0x467   :  { %v685_v24 = vld [vmem:[#allocation3 + $0x2b0] sm:$0xff]  ;;  %v692_v28 = vld [vmem:[#allocation3 + $0x2e8] sm:$0xff] }
 0x468   :  { %2432 = vmatpush1.bf16.msra.mxu0 %v2431_v40  ;;  %2496 = vmatpush1.bf16.msra.mxu1 %v2495_v41  ;;  %v658_v40 = vld [vmem:[#allocation3 + $0x1d8] sm:$0xff]  ;;  %v2531_v32 = vpack.c.bf16 %v685_v24, %v681_v22  ;;  %v2469_v36 = vpack.c.bf16 %v692_v28, %v688_v27  ;;  %v689_v38 = vld [vmem:[#allocation3 + $0x2d0] sm:$0xff]  ;;  %v723_v24 = vld [vmem:[#allocation3 + $0x3e0] sm:$0xff] }
 0x469   :  { %2434 = vmatprep.subr.bf16.mxu0 %v2433_v44  ;;  %2498 = vmatprep.subr.bf16.mxu1 %v2497_v45  ;;  %v662_v41 = vld [vmem:[#allocation3 + $0x1f8] sm:$0xff]  ;;  %v655_v44 = vld [vmem:[#allocation3 + $0x1c0] sm:$0xff]  ;;  %v693_v39 = vld [vmem:[#allocation3 + $0x2f0] sm:$0xff] }
 0x46a   :  { %v659_v45 = vld [vmem:[#allocation3 + $0x1e0] sm:$0xff]  ;;  %v2517_v47 = vpack.c.bf16 %v662_v41, %v658_v40  ;;  %v696_v40 = vld [vmem:[#allocation3 + $0x308] sm:$0xff]  ;;  %v709_v1 = vld [vmem:[#allocation3 + $0x370] sm:$0xff] }
 0x46b   :  { %v2455_v54 = vpack.c.bf16 %v659_v45, %v655_v44  ;;  %v700_v41 = vld [vmem:[#allocation3 + $0x328] sm:$0xff]  ;;  %v2535_v45 = vpack.c.bf16 %v693_v39, %v689_v38  ;;  %v713_v12 = vld [vmem:[#allocation3 + $0x390] sm:$0xff] }
 0x46c   :  { %2436 = vmatpush1.bf16.msra.mxu0 %v2435_v52  ;;  %2500 = vmatpush1.bf16.msra.mxu1 %v2499_v53  ;;  %v666_v52 = vld [vmem:[#allocation3 + $0x218] sm:$0xff]  ;;  %v2473_v48 = vpack.c.bf16 %v700_v41, %v696_v40  ;;  %v717_v13 = vld [vmem:[#allocation3 + $0x3b0] sm:$0xff]  ;;  %v1214_v39 = vld [vmem:[#allocation5 + $0x28] sm:$0xff] }
 0x46d   :  { %2438 = vmatprep.subr.bf16.mxu0 %v2437_v56  ;;  %2502 = vmatprep.subr.bf16.mxu1 %v2501_v57  ;;  %v670_v53 = vld [vmem:[#allocation3 + $0x238] sm:$0xff]  ;;  %v663_v56 = vld [vmem:[#allocation3 + $0x200] sm:$0xff]  ;;  %v721_v27 = vld [vmem:[#allocation3 + $0x3d0] sm:$0xff] }
 0x46e   :  { %v667_v57 = vld [vmem:[#allocation3 + $0x220] sm:$0xff]  ;;  %v2521_v60 = vpack.c.bf16 %v670_v53, %v666_v52  ;;  %v704_v52 = vld [vmem:[#allocation3 + $0x348] sm:$0xff]  ;;  %v725_v28 = vld [vmem:[#allocation3 + $0x3f0] sm:$0xff] }
 0x46f   :  { %v2459_v4 = vpack.c.bf16 %v667_v57, %v663_v56  ;;  %v708_v53 = vld [vmem:[#allocation3 + $0x368] sm:$0xff]  ;;  %v2539_v57 = vpack.c.bf16 %v701_v51, %v697_v50  ;;  %v1215_v41 = vld [vmem:[#allocation5 + $0x30] sm:$0xff] }
 0x470   :  { %2440 = vmatpush1.bf16.msra.mxu0 %v2439_v2  ;;  %2504 = vmatpush1.bf16.msra.mxu1 %v2503_v3  ;;  %v674_v2 = vld [vmem:[#allocation3 + $0x258] sm:$0xff]  ;;  %v2477_v61 = vpack.c.bf16 %v708_v53, %v704_v52  ;;  %v1222_v51 = vld [vmem:[#allocation5 + $0x68] sm:$0xff]  ;;  %v1223_v53 = vld [vmem:[#allocation5 + $0x70] sm:$0xff] }
 0x471   :  { %2442 = vmatprep.subr.bf16.mxu0 %v2441_v6  ;;  %2506 = vmatprep.subr.bf16.mxu1 %v2505_v7  ;;  %v678_v3 = vld [vmem:[#allocation3 + $0x278] sm:$0xff]  ;;  %v671_v6 = vld [vmem:[#allocation3 + $0x240] sm:$0xff] }
 0x472   :  { %v675_v7 = vld [vmem:[#allocation3 + $0x260] sm:$0xff]  ;;  %v2525_v9 = vpack.c.bf16 %v678_v3, %v674_v2  ;;  %v712_v2 = vld [vmem:[#allocation3 + $0x388] sm:$0xff] }
 0x473   :  { %v2463_v16 = vpack.c.bf16 %v675_v7, %v671_v6  ;;  %v716_v3 = vld [vmem:[#allocation3 + $0x3a8] sm:$0xff]  ;;  %v2543_v7 = vpack.c.bf16 %v709_v1, %v705_v63 }
 0x474   :  { %2444 = vmatpush1.bf16.msra.mxu0 %v2443_v14  ;;  %2508 = vmatpush1.bf16.msra.mxu1 %v2507_v15  ;;  %v682_v14 = vld [vmem:[#allocation3 + $0x298] sm:$0xff]  ;;  %v2481_v10 = vpack.c.bf16 %v716_v3, %v712_v2  ;;  %v1173_v3 = vsub.s32 1, %v3109_v25 }
 0x475   :  { %2446 = vmatprep.subr.bf16.mxu0 %v2445_v18  ;;  %2510 = vmatprep.subr.bf16.mxu1 %v2509_v19  ;;  %v686_v15 = vld [vmem:[#allocation3 + $0x2b8] sm:$0xff]  ;;  %v679_v18 = vld [vmem:[#allocation3 + $0x280] sm:$0xff] }
 0x476   :  { %v683_v19 = vld [vmem:[#allocation3 + $0x2a0] sm:$0xff]  ;;  %v2529_v21 = vpack.c.bf16 %v686_v15, %v682_v14  ;;  %v720_v14 = vld [vmem:[#allocation3 + $0x3c8] sm:$0xff]  ;;  %v1165_v2 = vld [vmem:[%s3407_s12] sm:$0xf] }
 0x477   :  { %v2467_v31 = vpack.c.bf16 %v683_v19, %v679_v18  ;;  %v724_v15 = vld [vmem:[#allocation3 + $0x3e8] sm:$0xff]  ;;  %v2547_v19 = vpack.c.bf16 %v717_v13, %v713_v12 }
 0x478   :  { %2448 = vmatpush1.bf16.msra.mxu0 %v2447_v29  ;;  %2512 = vmatpush1.bf16.msra.mxu1 %v2511_v30  ;;  %v690_v29 = vld [vmem:[#allocation3 + $0x2d8] sm:$0xff] }
 0x479   :  { %2450 = vmatprep.subr.bf16.mxu0 %v2449_v33  ;;  %2514 = vmatprep.subr.bf16.mxu1 %v2513_v35  ;;  %v694_v30 = vld [vmem:[#allocation3 + $0x2f8] sm:$0xff]  ;;  %v687_v33 = vld [vmem:[#allocation3 + $0x2c0] sm:$0xff] }
 0x47a   :  { %v691_v35 = vld [vmem:[#allocation3 + $0x2e0] sm:$0xff]  ;;  %v2533_v37 = vpack.c.bf16 %v694_v30, %v690_v29  ;;  %v2551_v30 = vpack.c.bf16 %v725_v28, %v721_v27 }
 0x47b   :  { %v2471_v44 = vpack.c.bf16 %v691_v35, %v687_v33  ;;  %v2876_v35 = vmov 0.0|0.0  }
 0x47c   :  { %2452 = vmatpush1.bf16.msra.mxu0 %v2451_v42  ;;  %2516 = vmatpush1.bf16.msra.mxu1 %v2515_v43  ;;  %v698_v42 = vld [vmem:[#allocation3 + $0x318] sm:$0xff] }
 0x47d   :  { %2454 = vmatprep.subr.bf16.mxu0 %v2453_v46  ;;  %2518 = vmatprep.subr.bf16.mxu1 %v2517_v47  ;;  %v702_v43 = vld [vmem:[#allocation3 + $0x338] sm:$0xff]  ;;  %v695_v46 = vld [vmem:[#allocation3 + $0x300] sm:$0xff] }
 0x47e   :  { %v699_v47 = vld [vmem:[#allocation3 + $0x320] sm:$0xff]  ;;  %v2537_v49 = vpack.c.bf16 %v702_v43, %v698_v42  ;;  %v1216_v42 = vld [vmem:[#allocation5 + $0x38] sm:$0xff] }
 0x47f   :  { %v2475_v56 = vpack.c.bf16 %v699_v47, %v695_v46  ;;  %v2563_v43 = vpack.c.bf16 %v1216_v42, %v1215_v41  ;;  %v1219_v47 = vld [vmem:[#allocation5 + $0x50] sm:$0xff] }
 0x480   :  { %2456 = vmatpush1.bf16.msra.mxu0 %v2455_v54  ;;  %2520 = vmatpush1.bf16.msra.mxu1 %v2519_v55  ;;  %v706_v54 = vld [vmem:[#allocation3 + $0x358] sm:$0xff] }
 0x481   :  { %2458 = vmatprep.subr.bf16.mxu0 %v2457_v58  ;;  %2522 = vmatprep.subr.bf16.mxu1 %v2521_v60  ;;  %v710_v55 = vld [vmem:[#allocation3 + $0x378] sm:$0xff]  ;;  %v703_v58 = vld [vmem:[#allocation3 + $0x340] sm:$0xff] }
 0x482   :  { %v707_v60 = vld [vmem:[#allocation3 + $0x360] sm:$0xff]  ;;  %v2541_v62 = vpack.c.bf16 %v710_v55, %v706_v54  ;;  %v1224_v54 = vld [vmem:[#allocation5 + $0x78] sm:$0xff] }
 0x483   :  { %v2479_v6 = vpack.c.bf16 %v707_v60, %v703_v58  ;;  %v2575_v55 = vpack.c.bf16 %v1224_v54, %v1223_v53  ;;  %v138_v53 = vld [vmem:[%s3400_s5 + $0x4] sm:$0xf] }
 0x484   :  { %2460 = vmatpush1.bf16.msra.mxu0 %v2459_v4  ;;  %2524 = vmatpush1.bf16.msra.mxu1 %v2523_v5  ;;  %v714_v4 = vld [vmem:[#allocation3 + $0x398] sm:$0xff] }
 0x485   :  { %2462 = vmatprep.subr.bf16.mxu0 %v2461_v8  ;;  %2526 = vmatprep.subr.bf16.mxu1 %v2525_v9  ;;  %v718_v5 = vld [vmem:[#allocation3 + $0x3b8] sm:$0xff]  ;;  %v711_v8 = vld [vmem:[#allocation3 + $0x380] sm:$0xff] }
 0x486   :  { %v715_v9 = vld [vmem:[#allocation3 + $0x3a0] sm:$0xff]  ;;  %v2545_v11 = vpack.c.bf16 %v718_v5, %v714_v4  ;;  %v1170_v4 = vrot.slane %v1165_v2, %v3117_v34  ;;  %v1177_v5 = vsub.s32 2, %v3109_v25 }
 0x487   :  { %v2483_v18 = vpack.c.bf16 %v715_v9, %v711_v8  ;;  %v1174_v8 = vrot.slane %v1165_v2, %v1173_v3 }
 0x488   :  { %2464 = vmatpush1.bf16.msra.mxu0 %v2463_v16  ;;  %2528 = vmatpush1.bf16.msra.mxu1 %v2527_v17  ;;  %v722_v16 = vld [vmem:[#allocation3 + $0x3d8] sm:$0xff] }
 0x489   :  { %2466 = vmatprep.subr.bf16.mxu0 %v2465_v20  ;;  %2530 = vmatprep.subr.bf16.mxu1 %v2529_v21  ;;  %v726_v17 = vld [vmem:[#allocation3 + $0x3f8] sm:$0xff]  ;;  %v719_v20 = vld [vmem:[#allocation3 + $0x3c0] sm:$0xff]  ;;  %v2485_v21 = vpack.c.bf16 %v724_v15, %v720_v14 }
 0x48a   :  { %v2549_v22 = vpack.c.bf16 %v726_v17, %v722_v16  ;;  %v2487_v29 = vpack.c.bf16 %v723_v24, %v719_v20  ;;  %v1178_v16 = vrot.slane %v1165_v2, %v1177_v5  ;;  %v1181_v17 = vsub.s32 3, %v3109_v25  ;;  %v140_v25 = vld [vmem:[%s3399_s4] sm:$0x3] }
 0x48c   :  { %2468 = vmatpush1.bf16.msra.mxu0 %v2467_v31  ;;  %2532 = vmatpush1.bf16.msra.mxu1 %v2531_v32  ;;  %v1209_v31 = vld [vmem:[#allocation5] sm:$0xff]  ;;  %v1210_v32 = vld [vmem:[#allocation5 + $0x8] sm:$0xff] }
 0x48d   :  { %2470 = vmatprep.subr.bf16.mxu0 %v2469_v36  ;;  %2534 = vmatprep.subr.bf16.mxu1 %v2533_v37  ;;  %v2554_v33 = vpack.c.bf16 %v1210_v32, %v1209_v31  ;;  %v1211_v36 = vld [vmem:[#allocation5 + $0x10] sm:$0xff]  ;;  %v1212_v37 = vld [vmem:[#allocation5 + $0x18] sm:$0xff] }
 0x48e   :  { %v2557_v38 = vpack.c.bf16 %v1212_v37, %v1211_v36 }
 0x490   :  { %2472 = vmatpush1.bf16.msra.mxu0 %v2471_v44  ;;  %2536 = vmatpush1.bf16.msra.mxu1 %v2535_v45  ;;  %v1217_v44 = vld [vmem:[#allocation5 + $0x40] sm:$0xff]  ;;  %v1218_v45 = vld [vmem:[#allocation5 + $0x48] sm:$0xff] }
 0x491   :  { %2474 = vmatprep.subr.bf16.mxu0 %v2473_v48  ;;  %2538 = vmatprep.subr.bf16.mxu1 %v2537_v49  ;;  %v2566_v46 = vpack.c.bf16 %v1218_v45, %v1217_v44  ;;  %v1220_v48 = vld [vmem:[#allocation5 + $0x58] sm:$0xff]  ;;  %v1221_v49 = vld [vmem:[#allocation5 + $0x60] sm:$0xff] }
 0x492   :  { %v2569_v50 = vpack.c.bf16 %v1220_v48, %v1219_v47  ;;  %v2572_v52 = vpack.c.bf16 %v1222_v51, %v1221_v49  ;;  %v137_v44 = vld [vmem:[%s3400_s5] sm:$0xf] }
 0x494   :  { %2476 = vmatpush1.bf16.msra.mxu0 %v2475_v56  ;;  %2540 = vmatpush1.bf16.msra.mxu1 %v2539_v57 }
 0x495   :  { %2478 = vmatprep.subr.bf16.mxu0 %v2477_v61  ;;  %2542 = vmatprep.subr.bf16.mxu1 %v2541_v62 }
 0x498   :  { %2480 = vmatpush1.bf16.msra.mxu0 %v2479_v6  ;;  %2544 = vmatpush1.bf16.msra.mxu1 %v2543_v7 }
 0x499   :  { %2482 = vmatprep.subr.bf16.mxu0 %v2481_v10  ;;  %2546 = vmatprep.subr.bf16.mxu1 %v2545_v11 }
 0x49c   :  { %2484 = vmatpush1.bf16.msra.mxu0 %v2483_v18  ;;  %2548 = vmatpush1.bf16.msra.mxu1 %v2547_v19 }
 0x49d   :  { %2486 = vmatprep.subr.bf16.mxu0 %v2485_v21  ;;  %2550 = vmatprep.subr.bf16.mxu1 %v2549_v22  ;;  %v1182_v22 = vrot.slane %v1165_v2, %v1181_v17 }
 0x4a0   :  { %2488 = vmatpush1.bf16.msra.mxu0 %v2487_v29  ;;  %2552 = vmatpush1.bf16.msra.mxu1 %v2551_v30 }
 0x4a1   :  { %2299 = vmatprep.subr.bf16.mxu1 %v2871_v0  ;;  %2553 = vmatprep.subr.bf16.mxu0 %v2876_v35 }
 0x4a3   :  { %1088 = vmatmul.mubr.f32.vlgmr.msra.gmra.mrb[2].mxu0 %v3251_v23  ;;  %1159 = vmatmul.mubr.f32.vlgmr.msra.gmra.mrb[16].mxu1 %v3251_v23  ;;  %v1213_v23 = vld [vmem:[#allocation5 + $0x20] sm:$0xff] }
 0x4a4   :  { %2296 = vmatprep.mubr.msk.f32.mxu0 %vm2872_vm0, %v2871_v0  ;;  %2301 = vmatprep.mubr.msk.bf16.mxu1 %vm2872_vm0, %v2871_v0  ;;  %v2560_v40 = vpack.c.bf16 %v1214_v39, %v1213_v23 }
 0x4a5   :  { %2555 = vmatpush3.bf16.msra.mxu0 %v2554_v33 }
 0x4a6   :  { %2556 = vmatprep.subr.bf16.mxu0 %v2876_v35 }
 0x4a9   :  { %2558 = vmatpush3.bf16.msra.mxu0 %v2557_v38  ;;  %2300 = vmatpush3.bf16.xpose.msra.mxu1 %v137_v44 }
 0x4aa   :  { %2559 = vmatprep.subr.bf16.mxu0 %v2876_v35  ;;  %2305 = vmatprep.subr.bf16.mxu1 %v2871_v0 }
 0x4ad   :  { %2561 = vmatpush3.bf16.msra.mxu0 %v2560_v40 }
 0x4ae   :  { %2562 = vmatprep.subr.bf16.mxu0 %v2876_v35 }
 0x4b1   :  { %2564 = vmatpush3.bf16.msra.mxu0 %v2563_v43 }
 0x4b2   :  { %2565 = vmatprep.subr.bf16.mxu0 %v2876_v35 }
 0x4b5   :  { %2567 = vmatpush3.bf16.msra.mxu0 %v2566_v46 }
 0x4b6   :  { %2568 = vmatprep.subr.bf16.mxu0 %v2876_v35 }
 0x4b9   :  { %2570 = vmatpush3.bf16.msra.mxu0 %v2569_v50 }
 0x4ba   :  { %2571 = vmatprep.subr.bf16.mxu0 %v2876_v35 }
 0x4bd   :  { %2573 = vmatpush3.bf16.msra.mxu0 %v2572_v52 }
 0x4be   :  { %2574 = vmatprep.subr.bf16.mxu0 %v2876_v35 }
 0x4c1   :  { %2576 = vmatpush3.bf16.msra.mxu0 %v2575_v55 }
 0x4c2   :  { %2317 = vmatprep.subr.bf16.mxu0 %v2871_v0 }
 0x536   :  { %v964_v56 = vpop.f32.mrb[12].mxu0  ;;  %v1005_v57 = vpop.f32.mrb[12].mxu1 }
 0x537   :  { %v966_v58 = vpop.f32.mrb[13].mxu0  ;;  %v1007_v60 = vpop.f32.mrb[13].mxu1 }
 0x538   :  { %v968_v61 = vpop.f32.mrb[14].mxu0  ;;  %v1009_v62 = vpop.f32.mrb[14].mxu1 }
 0x539   :  { %v969_v63 = vpop.f32.mrb[15].mxu0  ;;  %v1010_v1 = vpop.f32.mrb[15].mxu1 }
 0x576   :  { %v1089_v6 = vpop.f32.mrb[2].mxu0  ;;  %v1160_v7 = vpop.f32.mrb[16].mxu1 }
 0x577   :  { %v1090_v9 = vadd.f32 %v1089_v6, %v964_v56  ;;  %v1161_v10 = vadd.f32 %v1160_v7, %v1005_v57  ;;  %v1091_v11 = vpop.f32.mrb[3].mxu0  ;;  %v1162_v12 = vpop.f32.mrb[17].mxu1  ;;  %v2088_v56 = vld.sshfl [vmem:[%s3401_s6] sm:$0x11 pattern:$0x75316420] }
 0x578   :  { %v1092_v13 = vadd.f32 %v1091_v11, %v966_v58  ;;  %v1163_v14 = vadd.f32 %v1162_v12, %v1007_v60  ;;  %v1420_v57 = vrot.slane %v2088_v56, %v3112_v26  ;;  %v1413_v58 = vcombine.high %v2088_v56, %v2088_v56  ;;  %v1583_v56 = vld [vmem:[#allocation8 + $0x78] sm:$0xff] }
 0x579   :  { %v1187_v15 = vadd.f32 %v1170_v4, %v1090_v9  ;;  %v1189_v21 = vadd.f32 %v1178_v16, %v1161_v10 }
 0x57a   :  { %v1188_v18 = vadd.f32 %v1174_v8, %v1092_v13  ;;  %v1190_v24 = vadd.f32 %v1182_v22, %v1163_v14  ;;  %vm1430_vm10 = vcmp.gt.f32.partialorder %v1420_v57, 0.5  ;;  %v1427_v2 = vrot.slane %v1413_v58, %v3112_v26  ;;  %v1552_v58 = vld [vmem:[#allocation7] sm:$0xff] }
 0x57b   :  { %v1191_v19 = vmul.f32 0.5, %v1187_v15 }
 0x57c   :  { %v1195_v20 = vmul.f32 0.5, %v1188_v18  ;;  %v1200_v27 = vmul.f32 0.5, %v1190_v24  ;;  %vm1431_vm12 = vcmp.gt.f32.partialorder %v1427_v2, 0.5  ;;  %v1556_v2 = vld [vmem:[#allocation7 + $0x20] sm:$0xff] }
 0x57d   :  { %2724 = vtanh.f32 %v1191_v19 }
 0x57e   :  { %2726 = vtanh.f32 %v1195_v20  ;;  %v1464_v20 = vsel %vm155_vm1, %v137_v44, 0  ;;  %v1575_v44 = vld [vmem:[#allocation8 + $0x38] sm:$0xff] }
 0x57f   :  { %2728 = vtanh.f32 %v1189_v21  ;;  %v1510_v21 = vsel %vm155_vm1, %v138_v53, 0 }
 0x580   :  { %2730 = vtanh.f32 %v1200_v27  ;;  %v1568_v27 = vld [vmem:[#allocation8] sm:$0xff] }
 0x587   :  { %v2725_v28 = vpop.eup %2724 }
 0x588   :  { %v2727_v29 = vpop.eup %2726  ;;  %v1193_v30 = vadd.f32 1.0, %v2725_v28  ;;  %v1569_v28 = vld [vmem:[#allocation8 + $0x8] sm:$0xff] }
 0x589   :  { %v1197_v31 = vadd.f32 1.0, %v2727_v29  ;;  %v2729_v33 = vpop.eup %2728 }
 0x58a   :  { %v1194_v32 = vmul.f32 0.5, %v1193_v30  ;;  %v2731_v39 = vpop.eup %2730 }
 0x58b   :  { %v1198_v36 = vmul.f32 0.5, %v1197_v31  ;;  %v1202_v40 = vadd.f32 1.0, %v2731_v39  ;;  %v2578_v31 = vpack.c.bf16 %v1569_v28, %v1568_v27 }
 0x58c   :  { %v1205_v37 = vmul.f32 %v2729_v33, %v1194_v32  ;;  %v1571_v33 = vld [vmem:[#allocation8 + $0x18] sm:$0xff] }
 0x58d   :  { %v1204_v38 = vmul.f32 %v1198_v36, %v140_v25  ;;  %v1203_v41 = vmul.f32 0.5, %v1202_v40  ;;  %v1570_v25 = vld [vmem:[#allocation8 + $0x10] sm:$0xff] }
 0x58e   :  { %v2581_v36 = vpack.c.bf16 %v1571_v33, %v1570_v25 }
 0x58f   :  { %v1206_v23 = vadd.f32 %v1205_v37, %v1204_v38  ;;  %v1572_v37 = vld [vmem:[#allocation8 + $0x20] sm:$0xff]  ;;  %v1573_v38 = vld [vmem:[#allocation8 + $0x28] sm:$0xff] }
 0x590   :  { %v2584_v40 = vpack.c.bf16 %v1573_v38, %v1572_v37 }
 0x591   :  { %2732 = vtanh.f32 %v1206_v23  ;;  %1946 = vst [vmem:[%s3412_s17 + $0x2] sm:$0x3] %v1206_v23 }
 0x59b   :  { %v2733_v42 = vpop.eup %2732 }
 0x59c   :  { %v3288_v43 = vmul.f32 %v2733_v42, %v1203_v41  ;;  %v1574_v42 = vld [vmem:[#allocation8 + $0x30] sm:$0xff] }
 0x59e   :  { %2297 = vmatmul.mubr.f32.vlgmr.msra.gmra.mrb[16].mxu0 %v3288_v43  ;;  %1945 = vst [vmem:[%s3412_s17] sm:$0x3] %v3288_v43 }
 0x59f   :  { %2319 = vmatprep.mubr.msk.bf16.mxu0 %vm2872_vm0, %v2871_v0  ;;  %2318 = vmatpush3.bf16.msra.mxu0 %v1510_v21  ;;  %v2708_v21 = vld [vmem:[#allocation10 + $0x10] sm:$0xff]  }
 0x5a0   :  { %2393 = vmatprep.subr.bf16.mxu0 %v2871_v0 }
 0x671   :  { %v1291_v45 = vpop.f32.mrb[16].mxu0 }
 0x672   :  { %v1295_v46 = vpack.c.bf16 %v1291_v45, %v1291_v45  ;;  %v2298_v47 = vpop.f32.mrb[17].mxu0  ;;  %v2587_v45 = vpack.c.bf16 %v1575_v44, %v1574_v42  ;;  %v2711_v44 = vld [vmem:[#allocation10 + $0x28] sm:$0xff]  }
 0x673   :  { %v1577_v47 = vld [vmem:[#allocation8 + $0x48] sm:$0xff] }
 0x674   :  { %v1303_v48 = vrot.slane %v1295_v46, %v3112_v26  ;;  %v1576_v46 = vld [vmem:[#allocation8 + $0x40] sm:$0xff] }
 0x676   :  { %v1310_v49 = vrot.slane %v1303_v48, %v3112_v26  ;;  %v2590_v48 = vpack.c.bf16 %v1577_v47, %v1576_v46  ;;  %v2713_v46 = vld [vmem:[#allocation10 + $0x38] sm:$0xff]  }
 0x678   :  { %v2087_v50 = vpack.i.b16 %v1310_v49, %v1310_v49  ;;  %v1312_v51 = vunpack.i.h.s16 %v1310_v49  ;;  %v1578_v49 = vld [vmem:[#allocation8 + $0x50] sm:$0xff] }
 0x67a   :  { %v1317_v52 = vrot.slane %v2087_v50, %v3117_v34  ;;  %v1359_v54 = vpack.i.b16 %v1312_v51, %v1312_v51  ;;  %v1579_v50 = vld [vmem:[#allocation8 + $0x58] sm:$0xff] }
 0x67b   :  { %v2593_v51 = vpack.c.bf16 %v1579_v50, %v1578_v49 }
 0x67c   :  { %2302 = vmatmul.mubr.bf16.vlgmr.msra.gmra.mrb[20].mxu1 %v1317_v52  ;;  %v1363_v55 = vrot.slane %v1359_v54, %v3117_v34  ;;  %v1580_v52 = vld [vmem:[#allocation8 + $0x60] sm:$0xff] }
 0x67d   :  { %2306 = vmatpush3.bf16.xpose.msra.mxu1 %v138_v53  ;;  %2307 = vmatprep.mubr.msk.bf16.mxu1 %vm2872_vm0, %v2871_v0  ;;  %v1581_v53 = vld [vmem:[#allocation8 + $0x68] sm:$0xff] }
 0x67e   :  { %2311 = vmatprep.subr.bf16.mxu1 %v2871_v0  ;;  %v2596_v54 = vpack.c.bf16 %v1581_v53, %v1580_v52 }
 0x684   :  { %2308 = vmatmul.mubr.bf16.vlgmr.msra.gmra.mrb[24].mxu1 %v1363_v55  ;;  %v1582_v55 = vld [vmem:[#allocation8 + $0x70] sm:$0xff] }
 0x685   :  { %2313 = vmatprep.mubr.msk.bf16.mxu1 %vm2872_vm0, %v2871_v0  ;;  %2312 = vmatpush3.bf16.msra.mxu1 %v1464_v20  ;;  %v2599_v57 = vpack.c.bf16 %v1583_v56, %v1582_v55  ;;  %v2707_v20 = vld [vmem:[#allocation10 + $0x8] sm:$0xff]  }
 0x686   :  { %2577 = vmatprep.subr.bf16.mxu1 %v2876_v35 }
 0x74f   :  { %v1353_v60 = vpop.f32.mrb[20].mxu1 }
 0x750   :  { %v1432_v61 = vsel %vm1430_vm10, -1e+30, %v1353_v60  ;;  %v2303_v62 = vpop.f32.mrb[21].mxu1  ;;  %v1553_v60 = vld [vmem:[#allocation7 + $0x8] sm:$0xff] }
 0x751   :  { %v1356_v63 = vpop.f32.mrb[22].mxu1  ;;  %v1435_v1 = vsel %vm1434_vm11, %v1432_v61, -inf  ;;  %v1554_v62 = vld [vmem:[#allocation7 + $0x10] sm:$0xff] }
 0x752   :  { %1436 = vmax.xlane.f32.xlu1 %v1435_v1  ;;  %v2304_v3 = vpop.f32.mrb[23].mxu1  ;;  %v1555_v63 = vld [vmem:[#allocation7 + $0x18] sm:$0xff] }
 0x753   :  { %v2605_v1 = vpack.c.bf16 %v1555_v63, %v1554_v62  ;;  %v1557_v3 = vld [vmem:[#allocation7 + $0x28] sm:$0xff]  ;;  %v136_v63 = vld [vmem:[%s3420_s14 + $0x4] sm:$0xf] }
 0x757   :  { %v1399_v4 = vpop.f32.mrb[24].mxu1 }
 0x758   :  { %v1433_v5 = vsel %vm1431_vm12, -1e+30, %v1399_v4  ;;  %v2309_v6 = vpop.f32.mrb[25].mxu1  ;;  %v2608_v4 = vpack.c.bf16 %v1557_v3, %v1556_v2 }
 0x759   :  { %v1402_v7 = vpop.f32.mrb[26].mxu1  ;;  %v1438_v8 = vsel %vm1434_vm11, %v1433_v5, -inf  ;;  %v1559_v6 = vld [vmem:[#allocation7 + $0x38] sm:$0xff] }
 0x75a   :  { %1439 = vmax.xlane.f32.xlu0 %v1438_v8  ;;  %v2310_v9 = vpop.f32.mrb[27].mxu1  ;;  %v1561_v8 = vld [vmem:[#allocation7 + $0x48] sm:$0xff] }
 0x7df   :  { %v1437_v10 = vpop.xlane.xlu1 %1436 }
 0x7e0   :  { %v1441_v11 = vsub.f32 %v1432_v61, %v1437_v10  ;;  %v2602_v61 = vpack.c.bf16 %v1553_v60, %v1552_v58  ;;  %v1562_v10 = vld [vmem:[#allocation7 + $0x50] sm:$0xff] }
 0x7e2   :  { %v1443_v12 = vmul.f32 1.442695, %v1441_v11  ;;  %v1563_v11 = vld [vmem:[#allocation7 + $0x58] sm:$0xff] }
 0x7e4   :  { %2734 = vpow2.f32 %v1443_v12  ;;  %v2617_v12 = vpack.c.bf16 %v1563_v11, %v1562_v10 }
 0x7e7   :  { %v1440_v13 = vpop.xlane.xlu0 %1439 }
 0x7e8   :  { %v1442_v14 = vsub.f32 %v1433_v5, %v1440_v13  ;;  %v1558_v5 = vld [vmem:[#allocation7 + $0x30] sm:$0xff]  ;;  %v1564_v13 = vld [vmem:[#allocation7 + $0x60] sm:$0xff] }
 0x7e9   :  { %v2611_v7 = vpack.c.bf16 %v1559_v6, %v1558_v5 }
 0x7ea   :  { %v1445_v15 = vmul.f32 1.442695, %v1442_v14  ;;  %v1565_v14 = vld [vmem:[#allocation7 + $0x68] sm:$0xff] }
 0x7ec   :  { %2736 = vpow2.f32 %v1445_v15  ;;  %v2620_v15 = vpack.c.bf16 %v1565_v14, %v1564_v13 }
 0x7ee   :  { %v2735_v16 = vpop.eup %2734 }
 0x7ef   :  { %v1447_v17 = vsel %vm1434_vm11, %v2735_v16, 0.0 }
 0x7f0   :  { %1448 = vadd.xlane.f32.xlu1 %v1447_v17  ;;  %v1567_v17 = vld [vmem:[#allocation7 + $0x78] sm:$0xff] }
 0x7f6   :  { %v2737_v18 = vpop.eup %2736 }
 0x7f7   :  { %v1450_v19 = vsel %vm1434_vm11, %v2737_v18, 0.0 }
 0x7f8   :  { %1451 = vadd.xlane.f32.xlu0 %v1450_v19  ;;  %v2706_v19 = vld [vmem:[#allocation10] sm:$0xff]  }
 0x87d   :  { %v1449_v22 = vpop.xlane.xlu1 %1448 }
 0x87e   :  { %2738 = vrcp.f32 %v1449_v22  ;;  %v2709_v22 = vld [vmem:[#allocation10 + $0x18] sm:$0xff]  }
 0x885   :  { %v1452_v24 = vpop.xlane.xlu0 %1451 }
 0x886   :  { %2740 = vrcp.f32 %v1452_v24  ;;  %v2710_v24 = vld [vmem:[#allocation10 + $0x20] sm:$0xff]  }
 0x888   :  { %v2739_v29 = vpop.eup %2738 }
 0x889   :  { %v1455_v30 = vmul.f32 %v2739_v29, %v2735_v16  ;;  %v1566_v16 = vld [vmem:[#allocation7 + $0x70] sm:$0xff] }
 0x88b   :  { %v1457_v32 = vpack.c.bf16 %v1455_v30, %v1455_v30 }
 0x88d   :  { %2314 = vmatmul.mubr.msk.bf16.vlgmr.msra.gmra.mrb[28].mxu1 %vm1459_vm13, %v1457_v32 }
 0x88e   :  { %2579 = vmatpush3.bf16.msra.mxu1 %v2578_v31  ;;  %2355 = vmatprep.mubr.msk.f32.mxu1 %vm2872_vm0, %v2871_v0 }
 0x88f   :  { %2580 = vmatprep.subr.bf16.mxu1 %v2876_v35 }
 0x890   :  { %v2741_v23 = vpop.eup %2740 }
 0x891   :  { %v1456_v39 = vmul.f32 %v2741_v23, %v2737_v18  ;;  %v2623_v18 = vpack.c.bf16 %v1567_v17, %v1566_v16 }
 0x892   :  { %2582 = vmatpush3.bf16.msra.mxu1 %v2581_v36 }
 0x893   :  { %v1458_v41 = vpack.c.bf16 %v1456_v39, %v1456_v39  ;;  %2583 = vmatprep.subr.bf16.mxu1 %v2876_v35 }
 0x895   :  { %2320 = vmatmul.mubr.msk.bf16.vlgmr.msra.gmra.mrb[20].mxu0 %vm1459_vm13, %v1458_v41 }
 0x896   :  { %2585 = vmatpush3.bf16.msra.mxu1 %v2584_v40  ;;  %2409 = vmatprep.mubr.msk.bf16.mxu0 %vm2872_vm0, %v2871_v0 }
 0x897   :  { %2586 = vmatprep.subr.bf16.mxu1 %v2876_v35  ;;  %2394 = vmatpush3.bf16.msra.mxu0 %v2706_v19 }
 0x898   :  { %2395 = vmatprep.subr.bf16.mxu0 %v2871_v0 }
 0x89a   :  { %2588 = vmatpush3.bf16.msra.mxu1 %v2587_v45  ;;  %v2712_v45 = vld [vmem:[#allocation10 + $0x30] sm:$0xff]  }
 0x89b   :  { %2589 = vmatprep.subr.bf16.mxu1 %v2876_v35  ;;  %2396 = vmatpush3.bf16.msra.mxu0 %v2707_v20 }
 0x89c   :  { %2397 = vmatprep.subr.bf16.mxu0 %v2871_v0 }
 0x89e   :  { %2591 = vmatpush3.bf16.msra.mxu1 %v2590_v48 }
 0x89f   :  { %2592 = vmatprep.subr.bf16.mxu1 %v2876_v35  ;;  %2398 = vmatpush3.bf16.msra.mxu0 %v2708_v21 }
 0x8a0   :  { %2399 = vmatprep.subr.bf16.mxu0 %v2871_v0 }
 0x8a2   :  { %2594 = vmatpush3.bf16.msra.mxu1 %v2593_v51  ;;  %v135_v51 = vld [vmem:[%s3420_s14] sm:$0xf] }
 0x8a3   :  { %2595 = vmatprep.subr.bf16.mxu1 %v2876_v35  ;;  %2400 = vmatpush3.bf16.msra.mxu0 %v2709_v22 }
 0x8a4   :  { %2401 = vmatprep.subr.bf16.mxu0 %v2871_v0 }
 0x8a6   :  { %2597 = vmatpush3.bf16.msra.mxu1 %v2596_v54 }
 0x8a7   :  { %2598 = vmatprep.subr.bf16.mxu1 %v2876_v35  ;;  %2402 = vmatpush3.bf16.msra.mxu0 %v2710_v24 }
 0x8a8   :  { %2403 = vmatprep.subr.bf16.mxu0 %v2871_v0 }
 0x8aa   :  { %2600 = vmatpush3.bf16.msra.mxu1 %v2599_v57 }
 0x8ab   :  { %2601 = vmatprep.subr.bf16.mxu1 %v2876_v35  ;;  %2404 = vmatpush3.bf16.msra.mxu0 %v2711_v44 }
 0x8ac   :  { %2405 = vmatprep.subr.bf16.mxu0 %v2871_v0 }
 0x8ad   :  { %2356 = vmatmul.mubr.f32.vlgmr.msra.gmra.mrb[18].mxu1 %v3288_v43  ;;  %v1560_v43 = vld [vmem:[#allocation7 + $0x40] sm:$0xff] }
 0x8ae   :  { %2603 = vmatpush3.bf16.msra.mxu1 %v2602_v61  ;;  %2390 = vmatprep.mubr.msk.f32.mxu1 %vm2872_vm0, %v2871_v0  ;;  %v2614_v9 = vpack.c.bf16 %v1561_v8, %v1560_v43 }
 0x8af   :  { %2604 = vmatprep.subr.bf16.mxu1 %v2876_v35  ;;  %2406 = vmatpush3.bf16.msra.mxu0 %v2712_v45 }
 0x8b0   :  { %2407 = vmatprep.subr.bf16.mxu0 %v2871_v0 }
 0x8b2   :  { %2606 = vmatpush3.bf16.msra.mxu1 %v2605_v1 }
 0x8b3   :  { %2607 = vmatprep.subr.bf16.mxu1 %v2876_v35  ;;  %2408 = vmatpush3.bf16.msra.mxu0 %v2713_v46 }
 0x8b4   :  { %2413 = vmatprep.subr.bf16.mxu0 %v2871_v0 }
 0x8b6   :  { %2609 = vmatpush3.bf16.msra.mxu1 %v2608_v4 }
 0x8b7   :  { %2610 = vmatprep.subr.bf16.mxu1 %v2876_v35 }
 0x8ba   :  { %2612 = vmatpush3.bf16.msra.mxu1 %v2611_v7 }
 0x8bb   :  { %2613 = vmatprep.subr.bf16.mxu1 %v2876_v35 }
 0x8be   :  { %2615 = vmatpush3.bf16.msra.mxu1 %v2614_v9 }
 0x8bf   :  { %2616 = vmatprep.subr.bf16.mxu1 %v2876_v35 }
 0x8c2   :  { %2618 = vmatpush3.bf16.msra.mxu1 %v2617_v12 }
 0x8c3   :  { %2619 = vmatprep.subr.bf16.mxu1 %v2876_v35 }
 0x8c6   :  { %2621 = vmatpush3.bf16.msra.mxu1 %v2620_v15 }
 0x8c7   :  { %2622 = vmatprep.subr.bf16.mxu1 %v2876_v35 }
 0x8ca   :  { %2624 = vmatpush3.bf16.msra.mxu1 %v2623_v18 }
 0x960   :  { %v1500_v35 = vpop.f32.mrb[28].mxu1 }
 0x961   :  { %v2315_v27 = vpop.f32.mrb[29].mxu1  ;;  %v1954_v36 = vrot.slane %v1500_v35, %v3243_v59 }
 0x962   :  { %v1503_v28 = vpop.f32.mrb[30].mxu1 }
 0x963   :  { %v2316_v29 = vpop.f32.mrb[31].mxu1 }
 0x968   :  { %v1546_v30 = vpop.f32.mrb[20].mxu0 }
 0x969   :  { %v1656_v31 = vrot.slane %v1546_v30, 7  ;;  %v1961_v32 = vrot.slane %v1546_v30, %v3243_v59  ;;  %v2321_v25 = vpop.f32.mrb[21].mxu0 }
 0x96a   :  { %v1549_v33 = vpop.f32.mrb[22].mxu0 }
 0x96b   :  { %v1966_v37 = vrot.slane %v1961_v32, 7  ;;  %v2322_v38 = vpop.f32.mrb[23].mxu0  ;;  %v1657_v23 = vsel %vm766_vm6, %v1656_v31, %v1500_v35 }
 0x96c   :  { %2391 = vmatmul.mubr.f32.vlgmr.msra.gmra.mrb[18].mxu1 %v1657_v23 }
 0x96d   :  { %v1967_v39 = vsel %vm766_vm6, %v1966_v37, %v1954_v36 }
 0x96e   :  { %v1969_v40 = vsel %vm1968_vm7, %v1966_v37, %v1967_v39 }
 0x96f   :  { %v1971_v41 = vsel %vm1970_vm8, %v1966_v37, %v1969_v40 }
 0x970   :  { %v1973_v42 = vsel %vm1972_vm9, %v1966_v37, %v1971_v41 }
 0x971   :  { %1975 = vst [vmem:[%s3412_s17 + $0x6] sm:$0x3] %v1973_v42 }
 0xa3f   :  { %v1725_v47 = vpop.f32.mrb[18].mxu1 }
 0xa40   :  { %2742 = vtanh.f32 %v1725_v47  ;;  %v2392_v48 = vpop.f32.mrb[19].mxu1 }
 0xa4a   :  { %v2743_v49 = vpop.eup %2742 }
 0xa4b   :  { %1947 = vst [vmem:[%s3412_s17 + $0x4] sm:$0x3] %v2743_v49  ;;  %v1730_v50 = vpack.c.bf16 %v2743_v49, %v2743_v49 }
 0xa4d   :  { %2410 = vmatmul.mubr.bf16.vlgmr.msra.gmra.mrb[24].mxu0 %v1730_v50 }
 0xa4e   :  { %2415 = vmatprep.mubr.msk.bf16.mxu0 %vm2872_vm0, %v2871_v0  ;;  %2414 = vmatpush3.bf16.xpose.msra.mxu0 %v135_v51 }
 0xa4f   :  { %2419 = vmatprep.subr.bf16.mxu0 %v2871_v0 }
 0xb20   :  { %v1829_v52 = vpop.f32.mrb[24].mxu0 }
 0xb21   :  { %v1835_v53 = vpack.c.bf16 %v1829_v52, %v1829_v52  ;;  %v2411_v54 = vpop.f32.mrb[25].mxu0 }
 0xb22   :  { %v1832_v55 = vpop.f32.mrb[26].mxu0 }
 0xb23   :  { %v1843_v56 = vrot.slane %v1835_v53, %v3112_v26  ;;  %v2412_v57 = vpop.f32.mrb[27].mxu0 }
 0xb25   :  { %v1850_v58 = vrot.slane %v1843_v56, %v3112_v26 }
 0xb27   :  { %v2099_v60 = vpack.i.b16 %v1850_v58, %v1850_v58  ;;  %v1852_v61 = vunpack.i.h.s16 %v1850_v58 }
 0xb29   :  { %v1857_v62 = vrot.slane %v2099_v60, %v3117_v34  ;;  %v1899_v1 = vpack.i.b16 %v1852_v61, %v1852_v61 }
 0xb2b   :  { %2416 = vmatmul.mubr.bf16.vlgmr.msra.gmra.mrb[28].mxu0 %v1857_v62  ;;  %v1903_v2 = vrot.slane %v1899_v1, %v3117_v34 }
 0xb2c   :  { %2420 = vmatpush3.bf16.xpose.msra.mxu0 %v136_v63  ;;  %2421 = vmatprep.mubr.msk.bf16.mxu0 %vm2872_vm0, %v2871_v0 }
 0xb33   :  { %2422 = vmatmul.mubr.bf16.vlgmr.msra.gmra.mrb[32].mxu0 %v1903_v2 }
 0xbfe   :  { %v1893_v3 = vpop.f32.mrb[28].mxu0 }
 0xbff   :  { %v2417_v4 = vpop.f32.mrb[29].mxu0  ;;  %v2009_v9 = vrot.slane %v1893_v3, %v3243_v59 }
 0xc00   :  { %v1896_v26 = vpop.f32.mrb[30].mxu0 }
 0xc01   :  { %v2418_v5 = vpop.f32.mrb[31].mxu0 }
 0xc06   :  { %v1939_v6 = vpop.f32.mrb[32].mxu0 }
 0xc07   :  { %v2016_v7 = vrot.slane %v1939_v6, %v3243_v59  ;;  %v2423_v43 = vpop.f32.mrb[33].mxu0 }
 0xc08   :  { %v1942_v8 = vpop.f32.mrb[34].mxu0 }
 0xc09   :  { %v2019_v10 = vrot.slane %v2016_v7, 7  ;;  %v2424_v11 = vpop.f32.mrb[35].mxu0 }
 0xc0b   :  { %v2020_v12 = vsel %vm766_vm6, %v2019_v10, %v2009_v9 }
 0xc0c   :  { %v2021_v0 = vsel %vm1968_vm7, %v2019_v10, %v2020_v12 }
 0xc0d   :  { %v2022_v34 = vsel %vm1970_vm8, %v2019_v10, %v2021_v0 }
 0xc0e   :  { %v2023_v13 = vsel %vm1972_vm9, %v2019_v10, %v2022_v34 }
 0xc0f   :  { %2026 = vst.msk [vmem:[%s3412_s17 + $0xa] sm:$0x3] %vm2025_vm14, %v2023_v13 }
 0xc10   :  { %2031 = vsyncpa [#allocation4], 1 }
 0xc11   :  { %2032 = vsyncpa [#allocation6], 1 }
 0xc12   :  { %2033 = vsyncpa [#allocation9], 1 }

</bundles_post_ra>
